<compile_context>
chip_gen: v7x
topology: tpu7x:2x2x1
jax: 0.10.0
libtpu: 0.0.40
codegen_flags: <defaults>
</compile_context>

<pallas_src>
import functools

import jax
import jax.numpy as jnp
from jax import lax
from jax.experimental import pallas as pl
from jax.experimental.pallas import tpu as pltpu


# --------------------------------------------------------------------------
# Fused kernel: weight-dropout + time-blocked LSTM forward
# --------------------------------------------------------------------------
def _lstm_wdrop_kernel(x_ref, w_ih_t_ref, w_hh_t_ref, u_t_ref, b_ref,
                       h0_ref, c0_ref,
                       y_ref, hn_ref, cn_ref,
                       h_sc, c_sc, w_drop_sc, gx_sc,
                       *, hidden, t_block, p_drop, scale, compute_dtype):
    H = hidden
    blk = pl.program_id(0)

    # ---- once per call: fused weight dropout + state init -----------------
    @pl.when(blk == 0)
    def _init():
        w = w_hh_t_ref[...].astype(jnp.float32)
        # keep with prob (1-p), survivors scaled by 1/(1-p)
        w_drop_sc[...] = jnp.where(u_t_ref[...] >= jnp.float32(p_drop),
                                   w * jnp.float32(scale),
                                   jnp.float32(0.0))
        h_sc[...] = h0_ref[...].astype(jnp.float32)
        c_sc[...] = c0_ref[...].astype(jnp.float32)

    # ---- input projection hoisted out of the recurrence --------------------
    # one (Tb*B, I) @ (I, 4H) matmul + a single bias add for the whole block
    Tb, B, I = x_ref.shape
    x_flat = x_ref[...].reshape(Tb * B, I).astype(compute_dtype)
    gx = jnp.dot(x_flat, w_ih_t_ref[...].astype(compute_dtype),
                 preferred_element_type=jnp.float32)
    gx = gx + b_ref[...].astype(jnp.float32)          # broadcast (1, 4H)
    gx_sc[...] = gx.reshape(Tb, B, 4 * H)

    w_hh_d = w_drop_sc[...].astype(compute_dtype)      # (H, 4H), resident

    # ---- serial recurrence: only the small recurrent dot + gate math -------
    def step(t, carry):
        h, c = carry
        g = gx_sc[t] + jnp.dot(h.astype(compute_dtype), w_hh_d,
                               preferred_element_type=jnp.float32)  # (B, 4H)
        i_g = jax.nn.sigmoid(g[:, 0 * H:1 * H])
        f_g = jax.nn.sigmoid(g[:, 1 * H:2 * H])
        g_g = jnp.tanh(g[:, 2 * H:3 * H])
        o_g = jax.nn.sigmoid(g[:, 3 * H:4 * H])
        c_new = f_g * c + i_g * g_g
        h_new = o_g * jnp.tanh(c_new)
        y_ref[t] = h_new.astype(y_ref.dtype)
        return h_new, c_new

    h_fin, c_fin = lax.fori_loop(0, t_block, step,
                                 (h_sc[...], c_sc[...]), unroll=True)
    h_sc[...] = h_fin
    c_sc[...] = c_fin

    # ---- final hidden state written only once ------------------------------
    @pl.when(blk == pl.num_programs(0) - 1)
    def _finalize():
        hn_ref[...] = h_fin.astype(hn_ref.dtype)
        cn_ref[...] = c_fin.astype(cn_ref.dtype)


def _pick_time_block(T, desired):
    tb = max(1, min(desired, T))
    while T % tb != 0:
        tb -= 1
    return tb


def lstm_forward(x, hiddens, w_ih, w_hh_raw, b_ih, b_hh, u, p_eff, scale,
                 *, t_block=8, compute_dtype=jnp.float32):
    """Pallas LSTM forward with fused weight dropout.

    x: (T, B, I); hiddens: ((1,B,H), (1,B,H)); w_ih: (4H, I); w_hh_raw: (4H, H)
    u: (4H, H) uniform[0,1) randoms for the dropout mask.
    """
    h0, c0 = hiddens
    T, B, I = x.shape
    H = w_hh_raw.shape[1]
    tb = _pick_time_block(T, t_block)

    # glue: pre-transpose weights so the kernel does (rows, I)@(I,4H), (B,H)@(H,4H)
    w_ih_t = jnp.transpose(w_ih)                 # (I, 4H)
    w_hh_t = jnp.transpose(w_hh_raw)             # (H, 4H)
    u_t = jnp.transpose(u)                       # (H, 4H)
    b = (b_ih + b_hh).reshape(1, 4 * H)          # (1, 4H)

    y, hn, cn = pl.pallas_call(
        functools.partial(_lstm_wdrop_kernel, hidden=H, t_block=tb,
                          p_drop=float(p_eff), scale=float(scale),
                          compute_dtype=compute_dtype),
        out_shape=(
            jax.ShapeDtypeStruct((T, B, H), x.dtype),
            jax.ShapeDtypeStruct((B, H), x.dtype),
            jax.ShapeDtypeStruct((B, H), x.dtype),
        ),
        grid_spec=pltpu.PrefetchScalarGridSpec(
            num_scalar_prefetch=0,
            grid=(T // tb,),
            in_specs=[
                pl.BlockSpec((tb, B, I), lambda i: (i, 0, 0)),     # x block
                pl.BlockSpec((I, 4 * H), lambda i: (0, 0)),        # W_ih^T
                pl.BlockSpec((H, 4 * H), lambda i: (0, 0)),        # W_hh^T (raw)
                pl.BlockSpec((H, 4 * H), lambda i: (0, 0)),        # dropout randoms
                pl.BlockSpec((1, 4 * H), lambda i: (0, 0)),        # fused bias
                pl.BlockSpec((B, H), lambda i: (0, 0)),            # h0
                pl.BlockSpec((B, H), lambda i: (0, 0)),            # c0
            ],
            out_specs=[
                pl.BlockSpec((tb, B, H), lambda i: (i, 0, 0)),     # y block
                pl.BlockSpec((B, H), lambda i: (0, 0)),            # h_n
                pl.BlockSpec((B, H), lambda i: (0, 0)),            # c_n
            ],
            scratch_shapes=[
                pltpu.VMEM((B, H), jnp.float32),                   # h carry
                pltpu.VMEM((B, H), jnp.float32),                   # c carry
                pltpu.VMEM((H, 4 * H), jnp.float32),               # dropped W_hh^T
                pltpu.VMEM((tb, B, 4 * H), jnp.float32),           # staged x-gates
            ],
        ),
        compiler_params=pltpu.CompilerParams(
            dimension_semantics=("arbitrary",)),                   # recurrence
    )(x, w_ih_t, w_hh_t, u_t, b, h0[0], c0[0])

    return y, (hn[None], cn[None])


# --------------------------------------------------------------------------
# WeightDropout module equivalent
# --------------------------------------------------------------------------
class WeightDropout:
    """JAX/Pallas equivalent of the PyTorch WeightDropout(nn.LSTM) module."""

    def __init__(self, input_size, hidden_size, p_dropout=0.5, *, key):
        # (original module prints 'Using weight dropout!'; omitted to keep
        #  stdout clean for the harness)
        self.p = float(p_dropout)
        self.training = True
        self.hidden_size = hidden_size
        k = jax.random.split(key, 4)
        bound = 1.0 / float(hidden_size) ** 0.5
        H4 = 4 * hidden_size
        self.w_ih = jax.random.uniform(k[0], (H4, input_size), jnp.float32,
                                       -bound, bound)
        # weight_raw == raw weight_hh_l0
        self.weight_raw = jax.random.uniform(k[1], (H4, hidden_size),
                                             jnp.float32, -bound, bound)
        self.b_ih = jax.random.uniform(k[2], (H4,), jnp.float32, -bound, bound)
        self.b_hh = jax.random.uniform(k[3], (H4,), jnp.float32, -bound, bound)

    def _dropout_params(self, dropout_key):
        H = self.hidden_size
        if self.training and self.p > 0.0:
            u = jax.random.uniform(dropout_key, (4 * H, H), jnp.float32)
            p_eff = min(self.p, 1.0)
            # p_eff == 1.0 drops everything; scale=0 avoids 1/(1-p) -> inf
            scale = 1.0 / (1.0 - p_eff) if p_eff < 1.0 else 0.0
        else:
            u = jnp.zeros((4 * H, H), jnp.float32)   # u >= 0 -> keep all
            p_eff, scale = 0.0, 1.0
        return u, p_eff, scale

    def dropped_weight(self, dropout_key):
        """Pure-JAX equivalent of F.dropout(weight_raw, p) for checking."""
        u, p_eff, scale = self._dropout_params(dropout_key)
        return jnp.where(u >= p_eff, self.weight_raw * scale, 0.0)

    def forward(self, x, hiddens, dropout_key):
        u, p_eff, scale = self._dropout_params(dropout_key)
        return lstm_forward(x, hiddens, self.w_ih, self.weight_raw,
                            self.b_ih, self.b_hh, u, p_eff, scale)


# --------------------------------------------------------------------------
# Pure-JAX reference (same dropped weight -> checks the fused kernel)
# --------------------------------------------------------------------------
def lstm_reference(x, h0, c0, w_ih, w_hh, b_ih, b_hh):
    H = w_hh.shape[1]

    def step(carry, x_t):
        h, c = carry
        gates = x_t @ w_ih.T + h @ w_hh.T + b_ih + b_hh
        i = jax.nn.sigmoid(gates[:, :H])
        f = jax.nn.sigmoid(gates[:, H:2 * H])
        g = jnp.tanh(gates[:, 2 * H:3 * H])
        o = jax.nn.sigmoid(gates[:, 3 * H:])
        c = f * c + i * g
        h = o * jnp.tanh(c)
        return (h, c), h

    (h, c), ys = jax.lax.scan(step, (h0, c0), x)
    return ys, h, c


if __name__ == "__main__":
    key = jax.random.PRNGKey(0)
    k_mod, k_x, k_drop = jax.random.split(key, 3)

    # seq, batch, input_size, hidden_size -- lane/sublane-aligned small shapes
    T, B, I, H = 16, 8, 128, 128
    p_dropout = 0.5

    mod = WeightDropout(input_size=I, hidden_size=H, p_dropout=p_dropout,
                        key=k_mod)

    x = jax.random.normal(k_x, (T, B, I), jnp.float32)
    h0 = jnp.zeros((1, B, H), jnp.float32)
    c0 = jnp.zeros((1, B, H), jnp.float32)

    y, (hn, cn) = mod.forward(x, (h0, c0), dropout_key=k_drop)
    jax.block_until_ready((y, hn, cn))

    # check the fused kernel against a pure-JAX scan reference that uses the
    # exact same dropped recurrent weight
    w_hh_drop = mod.dropped_weight(k_drop)
    y_ref, hn_ref, cn_ref = lstm_reference(x, h0[0], c0[0], mod.w_ih,
                                           w_hh_drop, mod.b_ih, mod.b_hh)
    assert jnp.allclose(y, y_ref, atol=1e-4, rtol=1e-4), \
        float(jnp.max(jnp.abs(y - y_ref)))
    assert jnp.allclose(hn[0], hn_ref, atol=1e-4, rtol=1e-4)
    assert jnp.allclose(cn[0], cn_ref, atol=1e-4, rtol=1e-4)

    print("KERNEL_OK")
</pallas_src>

<mosaic_0001>
module attributes {stable_mosaic.version = 11 : i64} {
  func.func @_lstm_wdrop_kernel(%arg0: i32, %arg1: memref<8x8x128xf32, #tpu.memory_space<vmem>>, %arg2: memref<128x512xf32, #tpu.memory_space<vmem>>, %arg3: memref<128x512xf32, #tpu.memory_space<vmem>>, %arg4: memref<128x512xf32, #tpu.memory_space<vmem>>, %arg5: memref<1x512xf32, #tpu.memory_space<vmem>>, %arg6: memref<8x128xf32, #tpu.memory_space<vmem>>, %arg7: memref<8x128xf32, #tpu.memory_space<vmem>>, %arg8: memref<8x8x128xf32, #tpu.memory_space<vmem>>, %arg9: memref<8x128xf32, #tpu.memory_space<vmem>>, %arg10: memref<8x128xf32, #tpu.memory_space<vmem>>, %arg11: memref<8x128xf32, #tpu.memory_space<vmem>>, %arg12: memref<8x128xf32, #tpu.memory_space<vmem>>, %arg13: memref<128x512xf32, #tpu.memory_space<vmem>>, %arg14: memref<8x8x512xf32, #tpu.memory_space<vmem>>) attributes {dimension_semantics = [#tpu.dimension_semantics<arbitrary>], iteration_bounds = array<i64: 2>, scalar_prefetch = 0 : i64, scratch_operands = 4 : i64, tpu.core_type = #tpu.core_type<tc>, window_params = [{transform_indices = @transform_0, window_bounds = array<i64: 8, 8, 128>}, {pipeline_mode = #tpu.pipeline_mode<synchronous>, transform_indices = @transform_1, window_bounds = array<i64: 128, 512>}, {pipeline_mode = #tpu.pipeline_mode<synchronous>, transform_indices = @transform_2, window_bounds = array<i64: 128, 512>}, {pipeline_mode = #tpu.pipeline_mode<synchronous>, transform_indices = @transform_3, window_bounds = array<i64: 128, 512>}, {pipeline_mode = #tpu.pipeline_mode<synchronous>, transform_indices = @transform_4, window_bounds = array<i64: 1, 512>}, {pipeline_mode = #tpu.pipeline_mode<synchronous>, transform_indices = @transform_5, window_bounds = array<i64: 8, 128>}, {pipeline_mode = #tpu.pipeline_mode<synchronous>, transform_indices = @transform_6, window_bounds = array<i64: 8, 128>}, {transform_indices = @transform_7, window_bounds = array<i64: 8, 8, 128>}, {pipeline_mode = #tpu.pipeline_mode<synchronous>, transform_indices = @transform_8, window_bounds = array<i64: 8, 128>}, {pipeline_mode = #tpu.pipeline_mode<synchronous>, transform_indices = @transform_9, window_bounds = array<i64: 8, 128>}]} {
    %c0_i32 = arith.constant 0 : i32
    %0 = arith.cmpi eq, %arg0, %c0_i32 : i32
    %1 = arith.extui %0 : i1 to i32
    %c0_i32_0 = arith.constant 0 : i32
    %2 = arith.cmpi ne, %1, %c0_i32_0 : i32
    scf.if %2 {
      %c0_87 = arith.constant 0 : index
      %c0_88 = arith.constant 0 : index
      %292 = vector.load %arg3[%c0_87, %c0_88] : memref<128x512xf32, #tpu.memory_space<vmem>>, vector<128x512xf32>
      %c0_89 = arith.constant 0 : index
      %c0_90 = arith.constant 0 : index
      %293 = vector.load %arg4[%c0_89, %c0_90] : memref<128x512xf32, #tpu.memory_space<vmem>>, vector<128x512xf32>
      %cst_91 = arith.constant 5.000000e-01 : f32
      %294 = vector.broadcast %cst_91 : f32 to vector<128x512xf32>
      %295 = arith.cmpf oge, %293, %294 : vector<128x512xf32>
      %cst_92 = arith.constant 2.000000e+00 : f32
      %296 = vector.broadcast %cst_92 : f32 to vector<128x512xf32>
      %297 = arith.mulf %292, %296 : vector<128x512xf32>
      %cst_93 = arith.constant 0.000000e+00 : f32
      %298 = vector.broadcast %cst_93 : f32 to vector<128x512xf32>
      %299 = arith.select %295, %297, %298 : vector<128x512xi1>, vector<128x512xf32>
      %c0_94 = arith.constant 0 : index
      %c0_95 = arith.constant 0 : index
      %300 = vector.load %arg13[%c0_94, %c0_95] : memref<128x512xf32, #tpu.memory_space<vmem>>, vector<128x512xf32>
      tpu.vector_store %arg13[%c0_94, %c0_95], %299 {strides = array<i32>} : memref<128x512xf32, #tpu.memory_space<vmem>>, vector<128x512xf32>,
      %c0_96 = arith.constant 0 : index
      %c0_97 = arith.constant 0 : index
      %301 = vector.load %arg6[%c0_96, %c0_97] : memref<8x128xf32, #tpu.memory_space<vmem>>, vector<8x128xf32>
      %c0_98 = arith.constant 0 : index
      %c0_99 = arith.constant 0 : index
      %302 = vector.load %arg11[%c0_98, %c0_99] : memref<8x128xf32, #tpu.memory_space<vmem>>, vector<8x128xf32>
      tpu.vector_store %arg11[%c0_98, %c0_99], %301 {strides = array<i32>} : memref<8x128xf32, #tpu.memory_space<vmem>>, vector<8x128xf32>,
      %c0_100 = arith.constant 0 : index
      %c0_101 = arith.constant 0 : index
      %303 = vector.load %arg7[%c0_100, %c0_101] : memref<8x128xf32, #tpu.memory_space<vmem>>, vector<8x128xf32>
      %c0_102 = arith.constant 0 : index
      %c0_103 = arith.constant 0 : index
      %304 = vector.load %arg12[%c0_102, %c0_103] : memref<8x128xf32, #tpu.memory_space<vmem>>, vector<8x128xf32>
      tpu.vector_store %arg12[%c0_102, %c0_103], %303 {strides = array<i32>} : memref<8x128xf32, #tpu.memory_space<vmem>>, vector<8x128xf32>,
    } else {
    }
    %c0 = arith.constant 0 : index
    %c0_1 = arith.constant 0 : index
    %c0_2 = arith.constant 0 : index
    %3 = vector.load %arg1[%c0, %c0_1, %c0_2] : memref<8x8x128xf32, #tpu.memory_space<vmem>>, vector<8x8x128xf32>
    %4 = vector.shape_cast %3 : vector<8x8x128xf32> to vector<64x128xf32>
    %c0_3 = arith.constant 0 : index
    %c0_4 = arith.constant 0 : index
    %5 = vector.load %arg2[%c0_3, %c0_4] : memref<128x512xf32, #tpu.memory_space<vmem>>, vector<128x512xf32>
    %cst = arith.constant dense<0.000000e+00> : vector<64x512xf32>
    %6 = tpu.matmul %4, %5, %cst {dimension_numbers = #tpu.dot_dimension_numbers<[1], [0], [0], [1], [0, 0, 1, 1], [], []>} : vector<64x128xf32>, vector<128x512xf32>, vector<64x512xf32> -> vector<64x512xf32>
    %c0_5 = arith.constant 0 : index
    %c0_6 = arith.constant 0 : index
    %7 = vector.load %arg5[%c0_5, %c0_6] : memref<1x512xf32, #tpu.memory_space<vmem>>, vector<1x512xf32>
    %8 = vector.broadcast %7 : vector<1x512xf32> to vector<64x512xf32>
    %9 = arith.addf %6, %8 : vector<64x512xf32>
    %10 = vector.shape_cast %9 : vector<64x512xf32> to vector<8x8x512xf32>
    %c0_7 = arith.constant 0 : index
    %c0_8 = arith.constant 0 : index
    %c0_9 = arith.constant 0 : index
    %11 = vector.load %arg14[%c0_7, %c0_8, %c0_9] : memref<8x8x512xf32, #tpu.memory_space<vmem>>, vector<8x8x512xf32>
    tpu.vector_store %arg14[%c0_7, %c0_8, %c0_9], %10 {strides = array<i32>} : memref<8x8x512xf32, #tpu.memory_space<vmem>>, vector<8x8x512xf32>,
    %c0_10 = arith.constant 0 : index
    %c0_11 = arith.constant 0 : index
    %12 = vector.load %arg13[%c0_10, %c0_11] : memref<128x512xf32, #tpu.memory_space<vmem>>, vector<128x512xf32>
    %c0_12 = arith.constant 0 : index
    %c0_13 = arith.constant 0 : index
    %13 = vector.load %arg11[%c0_12, %c0_13] : memref<8x128xf32, #tpu.memory_space<vmem>>, vector<8x128xf32>
    %c0_14 = arith.constant 0 : index
    %c0_15 = arith.constant 0 : index
    %14 = vector.load %arg12[%c0_14, %c0_15] : memref<8x128xf32, #tpu.memory_space<vmem>>, vector<8x128xf32>
    %c0_i32_16 = arith.constant 0 : i32
    %15 = arith.index_cast %c0_i32_16 : i32 to index
    %c0_17 = arith.constant 0 : index
    %c0_18 = arith.constant 0 : index
    %16 = vector.load %arg14[%15, %c0_17, %c0_18] : memref<8x8x512xf32, #tpu.memory_space<vmem>>, vector<1x8x512xf32>
    %17 = vector.shape_cast %16 : vector<1x8x512xf32> to vector<8x512xf32>
    %cst_19 = arith.constant dense<0.000000e+00> : vector<8x512xf32>
    %18 = tpu.matmul %13, %12, %cst_19 {dimension_numbers = #tpu.dot_dimension_numbers<[1], [0], [0], [1], [0, 0, 1, 1], [], []>} : vector<8x128xf32>, vector<128x512xf32>, vector<8x512xf32> -> vector<8x512xf32>
    %19 = arith.addf %17, %18 : vector<8x512xf32>
    %20 = vector.extract_strided_slice %19 {offsets = [0, 0], sizes = [8, 128], strides = [1, 1]} : vector<8x512xf32> to vector<8x128xf32>
    %21 = arith.negf %20 : vector<8x128xf32>
    %22 = math.exp %21 : vector<8x128xf32>
    %cst_20 = arith.constant 1.000000e+00 : f32
    %23 = vector.broadcast %cst_20 : f32 to vector<8x128xf32>
    %24 = arith.addf %23, %22 : vector<8x128xf32>
    %25 = arith.divf %23, %24 : vector<8x128xf32>
    %26 = vector.extract_strided_slice %19 {offsets = [0, 128], sizes = [8, 128], strides = [1, 1]} : vector<8x512xf32> to vector<8x128xf32>
    %27 = arith.negf %26 : vector<8x128xf32>
    %28 = math.exp %27 : vector<8x128xf32>
    %cst_21 = arith.constant 1.000000e+00 : f32
    %29 = vector.broadcast %cst_21 : f32 to vector<8x128xf32>
    %30 = arith.addf %29, %28 : vector<8x128xf32>
    %31 = arith.divf %29, %30 : vector<8x128xf32>
    %32 = vector.extract_strided_slice %19 {offsets = [0, 256], sizes = [8, 128], strides = [1, 1]} : vector<8x512xf32> to vector<8x128xf32>
    %33 = math.tanh %32 : vector<8x128xf32>
    %34 = vector.extract_strided_slice %19 {offsets = [0, 384], sizes = [8, 128], strides = [1, 1]} : vector<8x512xf32> to vector<8x128xf32>
    %35 = arith.negf %34 : vector<8x128xf32>
    %36 = math.exp %35 : vector<8x128xf32>
    %cst_22 = arith.constant 1.000000e+00 : f32
    %37 = vector.broadcast %cst_22 : f32 to vector<8x128xf32>
    %38 = arith.addf %37, %36 : vector<8x128xf32>
    %39 = arith.divf %37, %38 : vector<8x128xf32>
    %40 = arith.mulf %31, %14 : vector<8x128xf32>
    %41 = arith.mulf %25, %33 : vector<8x128xf32>
    %42 = arith.addf %40, %41 : vector<8x128xf32>
    %43 = math.tanh %42 : vector<8x128xf32>
    %44 = arith.mulf %39, %43 : vector<8x128xf32>
    %45 = arith.index_cast %c0_i32_16 : i32 to index
    %c0_23 = arith.constant 0 : index
    %c0_24 = arith.constant 0 : index
    %46 = vector.load %arg8[%45, %c0_23, %c0_24] : memref<8x8x128xf32, #tpu.memory_space<vmem>>, vector<1x8x128xf32>
    %47 = vector.shape_cast %46 : vector<1x8x128xf32> to vector<8x128xf32>
    %48 = vector.shape_cast %44 : vector<8x128xf32> to vector<1x8x128xf32>
    tpu.vector_store %arg8[%45, %c0_23, %c0_24], %48 {strides = array<i32>} : memref<8x8x128xf32, #tpu.memory_space<vmem>>, vector<1x8x128xf32>,
    %c1_i32 = arith.constant 1 : i32
    %49 = arith.index_cast %c1_i32 : i32 to index
    %c0_25 = arith.constant 0 : index
    %c0_26 = arith.constant 0 : index
    %50 = vector.load %arg14[%49, %c0_25, %c0_26] : memref<8x8x512xf32, #tpu.memory_space<vmem>>, vector<1x8x512xf32>
    %51 = vector.shape_cast %50 : vector<1x8x512xf32> to vector<8x512xf32>
    %cst_27 = arith.constant dense<0.000000e+00> : vector<8x512xf32>
    %52 = tpu.matmul %44, %12, %cst_27 {dimension_numbers = #tpu.dot_dimension_numbers<[1], [0], [0], [1], [0, 0, 1, 1], [], []>} : vector<8x128xf32>, vector<128x512xf32>, vector<8x512xf32> -> vector<8x512xf32>
    %53 = arith.addf %51, %52 : vector<8x512xf32>
    %54 = vector.extract_strided_slice %53 {offsets = [0, 0], sizes = [8, 128], strides = [1, 1]} : vector<8x512xf32> to vector<8x128xf32>
    %55 = arith.negf %54 : vector<8x128xf32>
    %56 = math.exp %55 : vector<8x128xf32>
    %cst_28 = arith.constant 1.000000e+00 : f32
    %57 = vector.broadcast %cst_28 : f32 to vector<8x128xf32>
    %58 = arith.addf %57, %56 : vector<8x128xf32>
    %59 = arith.divf %57, %58 : vector<8x128xf32>
    %60 = vector.extract_strided_slice %53 {offsets = [0, 128], sizes = [8, 128], strides = [1, 1]} : vector<8x512xf32> to vector<8x128xf32>
    %61 = arith.negf %60 : vector<8x128xf32>
    %62 = math.exp %61 : vector<8x128xf32>
    %cst_29 = arith.constant 1.000000e+00 : f32
    %63 = vector.broadcast %cst_29 : f32 to vector<8x128xf32>
    %64 = arith.addf %63, %62 : vector<8x128xf32>
    %65 = arith.divf %63, %64 : vector<8x128xf32>
    %66 = vector.extract_strided_slice %53 {offsets = [0, 256], sizes = [8, 128], strides = [1, 1]} : vector<8x512xf32> to vector<8x128xf32>
    %67 = math.tanh %66 : vector<8x128xf32>
    %68 = vector.extract_strided_slice %53 {offsets = [0, 384], sizes = [8, 128], strides = [1, 1]} : vector<8x512xf32> to vector<8x128xf32>
    %69 = arith.negf %68 : vector<8x128xf32>
    %70 = math.exp %69 : vector<8x128xf32>
    %cst_30 = arith.constant 1.000000e+00 : f32
    %71 = vector.broadcast %cst_30 : f32 to vector<8x128xf32>
    %72 = arith.addf %71, %70 : vector<8x128xf32>
    %73 = arith.divf %71, %72 : vector<8x128xf32>
    %74 = arith.mulf %65, %42 : vector<8x128xf32>
    %75 = arith.mulf %59, %67 : vector<8x128xf32>
    %76 = arith.addf %74, %75 : vector<8x128xf32>
    %77 = math.tanh %76 : vector<8x128xf32>
    %78 = arith.mulf %73, %77 : vector<8x128xf32>
    %79 = arith.index_cast %c1_i32 : i32 to index
    %c0_31 = arith.constant 0 : index
    %c0_32 = arith.constant 0 : index
    %80 = vector.load %arg8[%79, %c0_31, %c0_32] : memref<8x8x128xf32, #tpu.memory_space<vmem>>, vector<1x8x128xf32>
    %81 = vector.shape_cast %80 : vector<1x8x128xf32> to vector<8x128xf32>
    %82 = vector.shape_cast %78 : vector<8x128xf32> to vector<1x8x128xf32>
    tpu.vector_store %arg8[%79, %c0_31, %c0_32], %82 {strides = array<i32>} : memref<8x8x128xf32, #tpu.memory_space<vmem>>, vector<1x8x128xf32>,
    %c2_i32 = arith.constant 2 : i32
    %83 = arith.index_cast %c2_i32 : i32 to index
    %c0_33 = arith.constant 0 : index
    %c0_34 = arith.constant 0 : index
    %84 = vector.load %arg14[%83, %c0_33, %c0_34] : memref<8x8x512xf32, #tpu.memory_space<vmem>>, vector<1x8x512xf32>
    %85 = vector.shape_cast %84 : vector<1x8x512xf32> to vector<8x512xf32>
    %cst_35 = arith.constant dense<0.000000e+00> : vector<8x512xf32>
    %86 = tpu.matmul %78, %12, %cst_35 {dimension_numbers = #tpu.dot_dimension_numbers<[1], [0], [0], [1], [0, 0, 1, 1], [], []>} : vector<8x128xf32>, vector<128x512xf32>, vector<8x512xf32> -> vector<8x512xf32>
    %87 = arith.addf %85, %86 : vector<8x512xf32>
    %88 = vector.extract_strided_slice %87 {offsets = [0, 0], sizes = [8, 128], strides = [1, 1]} : vector<8x512xf32> to vector<8x128xf32>
    %89 = arith.negf %88 : vector<8x128xf32>
    %90 = math.exp %89 : vector<8x128xf32>
    %cst_36 = arith.constant 1.000000e+00 : f32
    %91 = vector.broadcast %cst_36 : f32 to vector<8x128xf32>
    %92 = arith.addf %91, %90 : vector<8x128xf32>
    %93 = arith.divf %91, %92 : vector<8x128xf32>
    %94 = vector.extract_strided_slice %87 {offsets = [0, 128], sizes = [8, 128], strides = [1, 1]} : vector<8x512xf32> to vector<8x128xf32>
    %95 = arith.negf %94 : vector<8x128xf32>
    %96 = math.exp %95 : vector<8x128xf32>
    %cst_37 = arith.constant 1.000000e+00 : f32
    %97 = vector.broadcast %cst_37 : f32 to vector<8x128xf32>
    %98 = arith.addf %97, %96 : vector<8x128xf32>
    %99 = arith.divf %97, %98 : vector<8x128xf32>
    %100 = vector.extract_strided_slice %87 {offsets = [0, 256], sizes = [8, 128], strides = [1, 1]} : vector<8x512xf32> to vector<8x128xf32>
    %101 = math.tanh %100 : vector<8x128xf32>
    %102 = vector.extract_strided_slice %87 {offsets = [0, 384], sizes = [8, 128], strides = [1, 1]} : vector<8x512xf32> to vector<8x128xf32>
    %103 = arith.negf %102 : vector<8x128xf32>
    %104 = math.exp %103 : vector<8x128xf32>
    %cst_38 = arith.constant 1.000000e+00 : f32
    %105 = vector.broadcast %cst_38 : f32 to vector<8x128xf32>
    %106 = arith.addf %105, %104 : vector<8x128xf32>
    %107 = arith.divf %105, %106 : vector<8x128xf32>
    %108 = arith.mulf %99, %76 : vector<8x128xf32>
    %109 = arith.mulf %93, %101 : vector<8x128xf32>
    %110 = arith.addf %108, %109 : vector<8x128xf32>
    %111 = math.tanh %110 : vector<8x128xf32>
    %112 = arith.mulf %107, %111 : vector<8x128xf32>
    %113 = arith.index_cast %c2_i32 : i32 to index
    %c0_39 = arith.constant 0 : index
    %c0_40 = arith.constant 0 : index
    %114 = vector.load %arg8[%113, %c0_39, %c0_40] : memref<8x8x128xf32, #tpu.memory_space<vmem>>, vector<1x8x128xf32>
    %115 = vector.shape_cast %114 : vector<1x8x128xf32> to vector<8x128xf32>
    %116 = vector.shape_cast %112 : vector<8x128xf32> to vector<1x8x128xf32>
    tpu.vector_store %arg8[%113, %c0_39, %c0_40], %116 {strides = array<i32>} : memref<8x8x128xf32, #tpu.memory_space<vmem>>, vector<1x8x128xf32>,
    %c3_i32 = arith.constant 3 : i32
    %117 = arith.index_cast %c3_i32 : i32 to index
    %c0_41 = arith.constant 0 : index
    %c0_42 = arith.constant 0 : index
    %118 = vector.load %arg14[%117, %c0_41, %c0_42] : memref<8x8x512xf32, #tpu.memory_space<vmem>>, vector<1x8x512xf32>
    %119 = vector.shape_cast %118 : vector<1x8x512xf32> to vector<8x512xf32>
    %cst_43 = arith.constant dense<0.000000e+00> : vector<8x512xf32>
    %120 = tpu.matmul %112, %12, %cst_43 {dimension_numbers = #tpu.dot_dimension_numbers<[1], [0], [0], [1], [0, 0, 1, 1], [], []>} : vector<8x128xf32>, vector<128x512xf32>, vector<8x512xf32> -> vector<8x512xf32>
    %121 = arith.addf %119, %120 : vector<8x512xf32>
    %122 = vector.extract_strided_slice %121 {offsets = [0, 0], sizes = [8, 128], strides = [1, 1]} : vector<8x512xf32> to vector<8x128xf32>
    %123 = arith.negf %122 : vector<8x128xf32>
    %124 = math.exp %123 : vector<8x128xf32>
    %cst_44 = arith.constant 1.000000e+00 : f32
    %125 = vector.broadcast %cst_44 : f32 to vector<8x128xf32>
    %126 = arith.addf %125, %124 : vector<8x128xf32>
    %127 = arith.divf %125, %126 : vector<8x128xf32>
    %128 = vector.extract_strided_slice %121 {offsets = [0, 128], sizes = [8, 128], strides = [1, 1]} : vector<8x512xf32> to vector<8x128xf32>
    %129 = arith.negf %128 : vector<8x128xf32>
    %130 = math.exp %129 : vector<8x128xf32>
    %cst_45 = arith.constant 1.000000e+00 : f32
    %131 = vector.broadcast %cst_45 : f32 to vector<8x128xf32>
    %132 = arith.addf %131, %130 : vector<8x128xf32>
    %133 = arith.divf %131, %132 : vector<8x128xf32>
    %134 = vector.extract_strided_slice %121 {offsets = [0, 256], sizes = [8, 128], strides = [1, 1]} : vector<8x512xf32> to vector<8x128xf32>
    %135 = math.tanh %134 : vector<8x128xf32>
    %136 = vector.extract_strided_slice %121 {offsets = [0, 384], sizes = [8, 128], strides = [1, 1]} : vector<8x512xf32> to vector<8x128xf32>
    %137 = arith.negf %136 : vector<8x128xf32>
    %138 = math.exp %137 : vector<8x128xf32>
    %cst_46 = arith.constant 1.000000e+00 : f32
    %139 = vector.broadcast %cst_46 : f32 to vector<8x128xf32>
    %140 = arith.addf %139, %138 : vector<8x128xf32>
    %141 = arith.divf %139, %140 : vector<8x128xf32>
    %142 = arith.mulf %133, %110 : vector<8x128xf32>
    %143 = arith.mulf %127, %135 : vector<8x128xf32>
    %144 = arith.addf %142, %143 : vector<8x128xf32>
    %145 = math.tanh %144 : vector<8x128xf32>
    %146 = arith.mulf %141, %145 : vector<8x128xf32>
    %147 = arith.index_cast %c3_i32 : i32 to index
    %c0_47 = arith.constant 0 : index
    %c0_48 = arith.constant 0 : index
    %148 = vector.load %arg8[%147, %c0_47, %c0_48] : memref<8x8x128xf32, #tpu.memory_space<vmem>>, vector<1x8x128xf32>
    %149 = vector.shape_cast %148 : vector<1x8x128xf32> to vector<8x128xf32>
    %150 = vector.shape_cast %146 : vector<8x128xf32> to vector<1x8x128xf32>
    tpu.vector_store %arg8[%147, %c0_47, %c0_48], %150 {strides = array<i32>} : memref<8x8x128xf32, #tpu.memory_space<vmem>>, vector<1x8x128xf32>,
    %c4_i32 = arith.constant 4 : i32
    %151 = arith.index_cast %c4_i32 : i32 to index
    %c0_49 = arith.constant 0 : index
    %c0_50 = arith.constant 0 : index
    %152 = vector.load %arg14[%151, %c0_49, %c0_50] : memref<8x8x512xf32, #tpu.memory_space<vmem>>, vector<1x8x512xf32>
    %153 = vector.shape_cast %152 : vector<1x8x512xf32> to vector<8x512xf32>
    %cst_51 = arith.constant dense<0.000000e+00> : vector<8x512xf32>
    %154 = tpu.matmul %146, %12, %cst_51 {dimension_numbers = #tpu.dot_dimension_numbers<[1], [0], [0], [1], [0, 0, 1, 1], [], []>} : vector<8x128xf32>, vector<128x512xf32>, vector<8x512xf32> -> vector<8x512xf32>
    %155 = arith.addf %153, %154 : vector<8x512xf32>
    %156 = vector.extract_strided_slice %155 {offsets = [0, 0], sizes = [8, 128], strides = [1, 1]} : vector<8x512xf32> to vector<8x128xf32>
    %157 = arith.negf %156 : vector<8x128xf32>
    %158 = math.exp %157 : vector<8x128xf32>
    %cst_52 = arith.constant 1.000000e+00 : f32
    %159 = vector.broadcast %cst_52 : f32 to vector<8x128xf32>
    %160 = arith.addf %159, %158 : vector<8x128xf32>
    %161 = arith.divf %159, %160 : vector<8x128xf32>
    %162 = vector.extract_strided_slice %155 {offsets = [0, 128], sizes = [8, 128], strides = [1, 1]} : vector<8x512xf32> to vector<8x128xf32>
    %163 = arith.negf %162 : vector<8x128xf32>
    %164 = math.exp %163 : vector<8x128xf32>
    %cst_53 = arith.constant 1.000000e+00 : f32
    %165 = vector.broadcast %cst_53 : f32 to vector<8x128xf32>
    %166 = arith.addf %165, %164 : vector<8x128xf32>
    %167 = arith.divf %165, %166 : vector<8x128xf32>
    %168 = vector.extract_strided_slice %155 {offsets = [0, 256], sizes = [8, 128], strides = [1, 1]} : vector<8x512xf32> to vector<8x128xf32>
    %169 = math.tanh %168 : vector<8x128xf32>
    %170 = vector.extract_strided_slice %155 {offsets = [0, 384], sizes = [8, 128], strides = [1, 1]} : vector<8x512xf32> to vector<8x128xf32>
    %171 = arith.negf %170 : vector<8x128xf32>
    %172 = math.exp %171 : vector<8x128xf32>
    %cst_54 = arith.constant 1.000000e+00 : f32
    %173 = vector.broadcast %cst_54 : f32 to vector<8x128xf32>
    %174 = arith.addf %173, %172 : vector<8x128xf32>
    %175 = arith.divf %173, %174 : vector<8x128xf32>
    %176 = arith.mulf %167, %144 : vector<8x128xf32>
    %177 = arith.mulf %161, %169 : vector<8x128xf32>
    %178 = arith.addf %176, %177 : vector<8x128xf32>
    %179 = math.tanh %178 : vector<8x128xf32>
    %180 = arith.mulf %175, %179 : vector<8x128xf32>
    %181 = arith.index_cast %c4_i32 : i32 to index
    %c0_55 = arith.constant 0 : index
    %c0_56 = arith.constant 0 : index
    %182 = vector.load %arg8[%181, %c0_55, %c0_56] : memref<8x8x128xf32, #tpu.memory_space<vmem>>, vector<1x8x128xf32>
    %183 = vector.shape_cast %182 : vector<1x8x128xf32> to vector<8x128xf32>
    %184 = vector.shape_cast %180 : vector<8x128xf32> to vector<1x8x128xf32>
    tpu.vector_store %arg8[%181, %c0_55, %c0_56], %184 {strides = array<i32>} : memref<8x8x128xf32, #tpu.memory_space<vmem>>, vector<1x8x128xf32>,
    %c5_i32 = arith.constant 5 : i32
    %185 = arith.index_cast %c5_i32 : i32 to index
    %c0_57 = arith.constant 0 : index
    %c0_58 = arith.constant 0 : index
    %186 = vector.load %arg14[%185, %c0_57, %c0_58] : memref<8x8x512xf32, #tpu.memory_space<vmem>>, vector<1x8x512xf32>
    %187 = vector.shape_cast %186 : vector<1x8x512xf32> to vector<8x512xf32>
    %cst_59 = arith.constant dense<0.000000e+00> : vector<8x512xf32>
    %188 = tpu.matmul %180, %12, %cst_59 {dimension_numbers = #tpu.dot_dimension_numbers<[1], [0], [0], [1], [0, 0, 1, 1], [], []>} : vector<8x128xf32>, vector<128x512xf32>, vector<8x512xf32> -> vector<8x512xf32>
    %189 = arith.addf %187, %188 : vector<8x512xf32>
    %190 = vector.extract_strided_slice %189 {offsets = [0, 0], sizes = [8, 128], strides = [1, 1]} : vector<8x512xf32> to vector<8x128xf32>
    %191 = arith.negf %190 : vector<8x128xf32>
    %192 = math.exp %191 : vector<8x128xf32>
    %cst_60 = arith.constant 1.000000e+00 : f32
    %193 = vector.broadcast %cst_60 : f32 to vector<8x128xf32>
    %194 = arith.addf %193, %192 : vector<8x128xf32>
    %195 = arith.divf %193, %194 : vector<8x128xf32>
    %196 = vector.extract_strided_slice %189 {offsets = [0, 128], sizes = [8, 128], strides = [1, 1]} : vector<8x512xf32> to vector<8x128xf32>
    %197 = arith.negf %196 : vector<8x128xf32>
    %198 = math.exp %197 : vector<8x128xf32>
    %cst_61 = arith.constant 1.000000e+00 : f32
    %199 = vector.broadcast %cst_61 : f32 to vector<8x128xf32>
    %200 = arith.addf %199, %198 : vector<8x128xf32>
    %201 = arith.divf %199, %200 : vector<8x128xf32>
    %202 = vector.extract_strided_slice %189 {offsets = [0, 256], sizes = [8, 128], strides = [1, 1]} : vector<8x512xf32> to vector<8x128xf32>
    %203 = math.tanh %202 : vector<8x128xf32>
    %204 = vector.extract_strided_slice %189 {offsets = [0, 384], sizes = [8, 128], strides = [1, 1]} : vector<8x512xf32> to vector<8x128xf32>
    %205 = arith.negf %204 : vector<8x128xf32>
    %206 = math.exp %205 : vector<8x128xf32>
    %cst_62 = arith.constant 1.000000e+00 : f32
    %207 = vector.broadcast %cst_62 : f32 to vector<8x128xf32>
    %208 = arith.addf %207, %206 : vector<8x128xf32>
    %209 = arith.divf %207, %208 : vector<8x128xf32>
    %210 = arith.mulf %201, %178 : vector<8x128xf32>
    %211 = arith.mulf %195, %203 : vector<8x128xf32>
    %212 = arith.addf %210, %211 : vector<8x128xf32>
    %213 = math.tanh %212 : vector<8x128xf32>
    %214 = arith.mulf %209, %213 : vector<8x128xf32>
    %215 = arith.index_cast %c5_i32 : i32 to index
    %c0_63 = arith.constant 0 : index
    %c0_64 = arith.constant 0 : index
    %216 = vector.load %arg8[%215, %c0_63, %c0_64] : memref<8x8x128xf32, #tpu.memory_space<vmem>>, vector<1x8x128xf32>
    %217 = vector.shape_cast %216 : vector<1x8x128xf32> to vector<8x128xf32>
    %218 = vector.shape_cast %214 : vector<8x128xf32> to vector<1x8x128xf32>
    tpu.vector_store %arg8[%215, %c0_63, %c0_64], %218 {strides = array<i32>} : memref<8x8x128xf32, #tpu.memory_space<vmem>>, vector<1x8x128xf32>,
    %c6_i32 = arith.constant 6 : i32
    %219 = arith.index_cast %c6_i32 : i32 to index
    %c0_65 = arith.constant 0 : index
    %c0_66 = arith.constant 0 : index
    %220 = vector.load %arg14[%219, %c0_65, %c0_66] : memref<8x8x512xf32, #tpu.memory_space<vmem>>, vector<1x8x512xf32>
    %221 = vector.shape_cast %220 : vector<1x8x512xf32> to vector<8x512xf32>
    %cst_67 = arith.constant dense<0.000000e+00> : vector<8x512xf32>
    %222 = tpu.matmul %214, %12, %cst_67 {dimension_numbers = #tpu.dot_dimension_numbers<[1], [0], [0], [1], [0, 0, 1, 1], [], []>} : vector<8x128xf32>, vector<128x512xf32>, vector<8x512xf32> -> vector<8x512xf32>
    %223 = arith.addf %221, %222 : vector<8x512xf32>
    %224 = vector.extract_strided_slice %223 {offsets = [0, 0], sizes = [8, 128], strides = [1, 1]} : vector<8x512xf32> to vector<8x128xf32>
    %225 = arith.negf %224 : vector<8x128xf32>
    %226 = math.exp %225 : vector<8x128xf32>
    %cst_68 = arith.constant 1.000000e+00 : f32
    %227 = vector.broadcast %cst_68 : f32 to vector<8x128xf32>
    %228 = arith.addf %227, %226 : vector<8x128xf32>
    %229 = arith.divf %227, %228 : vector<8x128xf32>
    %230 = vector.extract_strided_slice %223 {offsets = [0, 128], sizes = [8, 128], strides = [1, 1]} : vector<8x512xf32> to vector<8x128xf32>
    %231 = arith.negf %230 : vector<8x128xf32>
    %232 = math.exp %231 : vector<8x128xf32>
    %cst_69 = arith.constant 1.000000e+00 : f32
    %233 = vector.broadcast %cst_69 : f32 to vector<8x128xf32>
    %234 = arith.addf %233, %232 : vector<8x128xf32>
    %235 = arith.divf %233, %234 : vector<8x128xf32>
    %236 = vector.extract_strided_slice %223 {offsets = [0, 256], sizes = [8, 128], strides = [1, 1]} : vector<8x512xf32> to vector<8x128xf32>
    %237 = math.tanh %236 : vector<8x128xf32>
    %238 = vector.extract_strided_slice %223 {offsets = [0, 384], sizes = [8, 128], strides = [1, 1]} : vector<8x512xf32> to vector<8x128xf32>
    %239 = arith.negf %238 : vector<8x128xf32>
    %240 = math.exp %239 : vector<8x128xf32>
    %cst_70 = arith.constant 1.000000e+00 : f32
    %241 = vector.broadcast %cst_70 : f32 to vector<8x128xf32>
    %242 = arith.addf %241, %240 : vector<8x128xf32>
    %243 = arith.divf %241, %242 : vector<8x128xf32>
    %244 = arith.mulf %235, %212 : vector<8x128xf32>
    %245 = arith.mulf %229, %237 : vector<8x128xf32>
    %246 = arith.addf %244, %245 : vector<8x128xf32>
    %247 = math.tanh %246 : vector<8x128xf32>
    %248 = arith.mulf %243, %247 : vector<8x128xf32>
    %249 = arith.index_cast %c6_i32 : i32 to index
    %c0_71 = arith.constant 0 : index
    %c0_72 = arith.constant 0 : index
    %250 = vector.load %arg8[%249, %c0_71, %c0_72] : memref<8x8x128xf32, #tpu.memory_space<vmem>>, vector<1x8x128xf32>
    %251 = vector.shape_cast %250 : vector<1x8x128xf32> to vector<8x128xf32>
    %252 = vector.shape_cast %248 : vector<8x128xf32> to vector<1x8x128xf32>
    tpu.vector_store %arg8[%249, %c0_71, %c0_72], %252 {strides = array<i32>} : memref<8x8x128xf32, #tpu.memory_space<vmem>>, vector<1x8x128xf32>,
    %c7_i32 = arith.constant 7 : i32
    %253 = arith.index_cast %c7_i32 : i32 to index
    %c0_73 = arith.constant 0 : index
    %c0_74 = arith.constant 0 : index
    %254 = vector.load %arg14[%253, %c0_73, %c0_74] : memref<8x8x512xf32, #tpu.memory_space<vmem>>, vector<1x8x512xf32>
    %255 = vector.shape_cast %254 : vector<1x8x512xf32> to vector<8x512xf32>
    %cst_75 = arith.constant dense<0.000000e+00> : vector<8x512xf32>
    %256 = tpu.matmul %248, %12, %cst_75 {dimension_numbers = #tpu.dot_dimension_numbers<[1], [0], [0], [1], [0, 0, 1, 1], [], []>} : vector<8x128xf32>, vector<128x512xf32>, vector<8x512xf32> -> vector<8x512xf32>
    %257 = arith.addf %255, %256 : vector<8x512xf32>
    %258 = vector.extract_strided_slice %257 {offsets = [0, 0], sizes = [8, 128], strides = [1, 1]} : vector<8x512xf32> to vector<8x128xf32>
    %259 = arith.negf %258 : vector<8x128xf32>
    %260 = math.exp %259 : vector<8x128xf32>
    %cst_76 = arith.constant 1.000000e+00 : f32
    %261 = vector.broadcast %cst_76 : f32 to vector<8x128xf32>
    %262 = arith.addf %261, %260 : vector<8x128xf32>
    %263 = arith.divf %261, %262 : vector<8x128xf32>
    %264 = vector.extract_strided_slice %257 {offsets = [0, 128], sizes = [8, 128], strides = [1, 1]} : vector<8x512xf32> to vector<8x128xf32>
    %265 = arith.negf %264 : vector<8x128xf32>
    %266 = math.exp %265 : vector<8x128xf32>
    %cst_77 = arith.constant 1.000000e+00 : f32
    %267 = vector.broadcast %cst_77 : f32 to vector<8x128xf32>
    %268 = arith.addf %267, %266 : vector<8x128xf32>
    %269 = arith.divf %267, %268 : vector<8x128xf32>
    %270 = vector.extract_strided_slice %257 {offsets = [0, 256], sizes = [8, 128], strides = [1, 1]} : vector<8x512xf32> to vector<8x128xf32>
    %271 = math.tanh %270 : vector<8x128xf32>
    %272 = vector.extract_strided_slice %257 {offsets = [0, 384], sizes = [8, 128], strides = [1, 1]} : vector<8x512xf32> to vector<8x128xf32>
    %273 = arith.negf %272 : vector<8x128xf32>
    %274 = math.exp %273 : vector<8x128xf32>
    %cst_78 = arith.constant 1.000000e+00 : f32
    %275 = vector.broadcast %cst_78 : f32 to vector<8x128xf32>
    %276 = arith.addf %275, %274 : vector<8x128xf32>
    %277 = arith.divf %275, %276 : vector<8x128xf32>
    %278 = arith.mulf %269, %246 : vector<8x128xf32>
    %279 = arith.mulf %263, %271 : vector<8x128xf32>
    %280 = arith.addf %278, %279 : vector<8x128xf32>
    %281 = math.tanh %280 : vector<8x128xf32>
    %282 = arith.mulf %277, %281 : vector<8x128xf32>
    %283 = arith.index_cast %c7_i32 : i32 to index
    %c0_79 = arith.constant 0 : index
    %c0_80 = arith.constant 0 : index
    %284 = vector.load %arg8[%283, %c0_79, %c0_80] : memref<8x8x128xf32, #tpu.memory_space<vmem>>, vector<1x8x128xf32>
    %285 = vector.shape_cast %284 : vector<1x8x128xf32> to vector<8x128xf32>
    %286 = vector.shape_cast %282 : vector<8x128xf32> to vector<1x8x128xf32>
    tpu.vector_store %arg8[%283, %c0_79, %c0_80], %286 {strides = array<i32>} : memref<8x8x128xf32, #tpu.memory_space<vmem>>, vector<1x8x128xf32>,
    %c8_i32 = arith.constant 8 : i32
    %c0_81 = arith.constant 0 : index
    %c0_82 = arith.constant 0 : index
    %287 = vector.load %arg11[%c0_81, %c0_82] : memref<8x128xf32, #tpu.memory_space<vmem>>, vector<8x128xf32>
    tpu.vector_store %arg11[%c0_81, %c0_82], %282 {strides = array<i32>} : memref<8x128xf32, #tpu.memory_space<vmem>>, vector<8x128xf32>,
    %c0_83 = arith.constant 0 : index
    %c0_84 = arith.constant 0 : index
    %288 = vector.load %arg12[%c0_83, %c0_84] : memref<8x128xf32, #tpu.memory_space<vmem>>, vector<8x128xf32>
    tpu.vector_store %arg12[%c0_83, %c0_84], %280 {strides = array<i32>} : memref<8x128xf32, #tpu.memory_space<vmem>>, vector<8x128xf32>,
    %c1_i32_85 = arith.constant 1 : i32
    %289 = arith.cmpi eq, %arg0, %c1_i32_85 : i32
    %290 = arith.extui %289 : i1 to i32
    %c0_i32_86 = arith.constant 0 : i32
    %291 = arith.cmpi ne, %290, %c0_i32_86 : i32
    scf.if %291 {
      %c0_87 = arith.constant 0 : index
      %c0_88 = arith.constant 0 : index
      %292 = vector.load %arg9[%c0_87, %c0_88] : memref<8x128xf32, #tpu.memory_space<vmem>>, vector<8x128xf32>
      tpu.vector_store %arg9[%c0_87, %c0_88], %282 {strides = array<i32>} : memref<8x128xf32, #tpu.memory_space<vmem>>, vector<8x128xf32>,
      %c0_89 = arith.constant 0 : index
      %c0_90 = arith.constant 0 : index
      %293 = vector.load %arg10[%c0_89, %c0_90] : memref<8x128xf32, #tpu.memory_space<vmem>>, vector<8x128xf32>
      tpu.vector_store %arg10[%c0_89, %c0_90], %280 {strides = array<i32>} : memref<8x128xf32, #tpu.memory_space<vmem>>, vector<8x128xf32>,
    } else {
    }
    return
  }
  func.func @transform_0(%arg0: i32) -> (i32, i32, i32) {
    %c0_i32 = arith.constant 0 : i32
    %c0_i32_0 = arith.constant 0 : i32
    %c0_i32_1 = arith.constant 0 : i32
    return %arg0, %c0_i32, %c0_i32_0 : i32, i32, i32
  }
  func.func @transform_1(%arg0: i32) -> (i32, i32) {
    %c0_i32 = arith.constant 0 : i32
    %c0_i32_0 = arith.constant 0 : i32
    %c0_i32_1 = arith.constant 0 : i32
    return %c0_i32, %c0_i32_0 : i32, i32
  }
  func.func @transform_2(%arg0: i32) -> (i32, i32) {
    %c0_i32 = arith.constant 0 : i32
    %c0_i32_0 = arith.constant 0 : i32
    %c0_i32_1 = arith.constant 0 : i32
    return %c0_i32, %c0_i32_0 : i32, i32
  }
  func.func @transform_3(%arg0: i32) -> (i32, i32) {
    %c0_i32 = arith.constant 0 : i32
    %c0_i32_0 = arith.constant 0 : i32
    %c0_i32_1 = arith.constant 0 : i32
    return %c0_i32, %c0_i32_0 : i32, i32
  }
  func.func @transform_4(%arg0: i32) -> (i32, i32) {
    %c0_i32 = arith.constant 0 : i32
    %c0_i32_0 = arith.constant 0 : i32
    %c0_i32_1 = arith.constant 0 : i32
    return %c0_i32, %c0_i32_0 : i32, i32
  }
  func.func @transform_5(%arg0: i32) -> (i32, i32) {
    %c0_i32 = arith.constant 0 : i32
    %c0_i32_0 = arith.constant 0 : i32
    %c0_i32_1 = arith.constant 0 : i32
    return %c0_i32, %c0_i32_0 : i32, i32
  }
  func.func @transform_6(%arg0: i32) -> (i32, i32) {
    %c0_i32 = arith.constant 0 : i32
    %c0_i32_0 = arith.constant 0 : i32
    %c0_i32_1 = arith.constant 0 : i32
    return %c0_i32, %c0_i32_0 : i32, i32
  }
  func.func @transform_7(%arg0: i32) -> (i32, i32, i32) {
    %c0_i32 = arith.constant 0 : i32
    %c0_i32_0 = arith.constant 0 : i32
    %c0_i32_1 = arith.constant 0 : i32
    return %arg0, %c0_i32, %c0_i32_0 : i32, i32, i32
  }
  func.func @transform_8(%arg0: i32) -> (i32, i32) {
    %c0_i32 = arith.constant 0 : i32
    %c0_i32_0 = arith.constant 0 : i32
    %c0_i32_1 = arith.constant 0 : i32
    return %c0_i32, %c0_i32_0 : i32, i32
  }
  func.func @transform_9(%arg0: i32) -> (i32, i32) {
    %c0_i32 = arith.constant 0 : i32
    %c0_i32_0 = arith.constant 0 : i32
    %c0_i32_1 = arith.constant 0 : i32
    return %c0_i32, %c0_i32_0 : i32, i32
  }
}

</mosaic_0001>

<bundles_post_ra>
// kernel: tpu_custom_call.1
= control target key start
LH: loop header
LB: loop body
LE: loop exit
PB: predicated region body
PF: predicated region fallthrough
CT: control target
= control target key end

     0   :  { %s4862_s0 = inlined_call_operand.hbm [shape: f32[16,8,128], index: 0, kind: input, shape index: {}]   ;;  %s4863_s1 = inlined_call_operand.hbm [shape: f32[128,512], index: 1, kind: input, shape index: {}]   ;;  %s4864_s2 = inlined_call_operand.hbm [shape: f32[128,512], index: 2, kind: input, shape index: {}]   ;;  %s4865_s3 = inlined_call_operand.hbm [shape: f32[128,512], index: 3, kind: input, shape index: {}]   ;;  %s4866_s4 = inlined_call_operand.hbm [shape: f32[1,512], index: 4, kind: input, shape index: {}]   ;;  %s4867_s5 = inlined_call_operand.vmem [shape: f32[8,128], index: 5, kind: input, shape index: {}]   ;;  %s4868_s6 = inlined_call_operand.vmem [shape: f32[8,128], index: 6, kind: input, shape index: {}]   ;;  %s4869_s7 = inlined_call_operand.hbm [shape: f32[16,8,128], index: 7, kind: output, shape index: {0}]   ;;  %s4870_s8 = inlined_call_operand.hbm [shape: f32[8,128], index: 8, kind: output, shape index: {1}]   ;;  %s4871_s9 = inlined_call_operand.hbm [shape: f32[8,128], index: 9, kind: output, shape index: {2}]  }
   0x1   :  { %4878 = sst [smem:[#allocation26_spill]] %s4871_s9 }
   0x2   :  { %15 = vsyncpa [#allocation7], 0 }
   0x3   :  { %17 = vsyncpa [#allocation7 + $0x1], 0 }
   0x4   :  { %18 = vsyncpa [#allocation10], 0 }
   0x5   :  { %19 = vsyncpa [#allocation13], 0 }
   0x6   :  { %20 = vsyncpa [#allocation8], 0 }
   0x7   :  { %22 = vsyncpa [#allocation8 + $0x1], 0 }
   0x8   :  { %23 = vsyncpa [#allocation17], 0  ;;  %s4081_s30 = smov 0   ;;  %s4083_s10 = smov 0  }
   0x9   :  { %s4085_s11 = smov 0   ;;  %s4087_s12 = smov 0  }
   0xa LB: > { %4879 = sst [smem:[#allocation24_spill]] %s4002_s30  ;;  %s4102_s13 = sadd.s32 4294967295, %s4014_s12   ;;  %s4014_s12 = sphi %s4087_s12, %s4912_s12   ;;  %s4010_s11 = sphi %s4085_s11, %s4911_s11   ;;  %s4006_s10 = sphi %s4083_s10, %s4910_s10   ;;  %s4002_s30 = sphi %s4081_s30, %s4909_s30  }
   0xb   : > { %s2805_s14 = sadd.s32 4294967294, %s4014_s12   ;;  %p49_p0 = scmp.ne.s32.totalorder %s4006_s10, %s4002_s30 }
   0xc   : > { %p4872_p1 = scmp.eq.s32.totalorder %s4102_s13, 0  ;;  %p205_p3 = scmp.eq.s32.totalorder %s2805_s14, 1 }
   0xd   : > { %p2806_p5 = scmp.ge.s32.totalorder %s4014_s12, 1  ;;  %p254_p7 = scmp.lt.s32.totalorder %s4014_s12, 3 }
   0xe   : > { %p4111_p4 = por %p4872_p1, %p49_p0  ;;  %p4116_p6 = por %p205_p3, %p49_p0 }
   0xf   : > { %p4122_p9 = pnand %p2806_p5, %p254_p7  ;;  %s4016_s18 = smov [#allocation9]  }
  0x10   : > { %s4880_s15 = scalar_select %p4111_p4, 1, 0 }
  0x11   : > { %s4881_s16 = scalar_select %p4116_p6, 1, 0 }
  0x12   : > { %s4883_s17 = scalar_select %p4122_p9, 1, 0 }
  0x13   : > { %4882 = sst [smem:[#allocation25_spill]] %s4881_s16  ;;  %s266_s19 = sshll.u32 %s4016_s18, 4  ;;  %s4126_s19 = int_to_ptr.vmem [resolvable:$true] %s266_s19 }
  0x14   : > { %p3534_p10 = pneg %p4122_p9  ;;  %s4017_s21 = smov [#allocation12]  }
  0x15   : > { %s292_s22 = sshll.u32 %s4017_s21, 4  ;;  %s4018_s23 = smov [#allocation11]   ;;  %s4137_s22 = int_to_ptr.vmem [resolvable:$true] %s292_s22 }
  0x16   : > { %p4133_p12 = pnand %p3534_p10, %p4872_p1  ;;  %s4139_s24 = sshll.u32 %s4018_s23, 4  ;;  %s280_s24 = int_to_ptr.vmem [resolvable:$true] %s4139_s24 }
  0x17   : > { %s3742_s27 = scalar_lea.hbm %s4863_s1, 8192 }
  0x18   : > { %p3743_p13 = scmp.ne.s32.totalorder %s4863_s1, %s3742_s27  ;;  %p4149_p0 = pneg %p4133_p12 }
  0x19   : > { %p3749_p7 = scmp.lt.u32.totalorder %s3742_s27, %s4863_s1 }
  0x1a   : > { %p3745_p3 = pnand %p4149_p0, %p3743_p13 }
  0x1c   : > { %p3746_p5 = pneg %p3745_p3 }
  0x1e   : > { %p3751_p10 = pnand %p3749_p7, %p3746_p5 }
  0x20   : > { %3754 = shalt.err (!%p3751_p10)
}
  0x21   : > { %s3755_s23 = scalar_lea.vmem %s4126_s19, 8192  ;;  %p3763_p2 = scmp.lt.s32.totalorder %s4126_s19, %s4126_s19 }
  0x22   : > { %p3756_p11 = scmp.ne.s32.totalorder %s4126_s19, %s3755_s23  ;;  %p3764_p6 = scmp.lt.s32.totalorder %s3755_s23, %s3755_s23 }
  0x24   : > { %p3758_p8 = pnand %p3756_p11, %p4149_p0  ;;  %p3765_p13 = por %p3764_p6, %p3763_p2 }
  0x26   : > { %p3759_p1 = pneg %p3758_p8 }
  0x28   : > { %p3766_p3 = pnand %p3765_p13, %p3759_p1 }
  0x2a   : > { %3769 = shalt.err (!%p3766_p3)
}
  0x2b   : > { %s4019_s25 = smov 512   ;;  %s4020_s26 = smov 32  }
  0x2c   : > { %3537 = dma.hbm_to_vmem [thread:$0]  (!%p4133_p12), %s4863_s1, 8192, %s4126_s19, [#allocation10], %s4019_s25, %s4019_s25, %s4020_s26  }
  0x2d   : > { %s3770_s21 = scalar_lea.hbm %s4865_s3, 8192 }
  0x2e   : > { %p3771_p1 = scmp.ne.s32.totalorder %s4865_s3, %s3770_s21  ;;  %p3777_p8 = scmp.lt.u32.totalorder %s3770_s21, %s4865_s3 }
  0x30   : > { %p3773_p2 = pnand %p3771_p1, %p4149_p0 }
  0x32   : > { %p3774_p6 = pneg %p3773_p2 }
  0x34   : > { %p3779_p11 = pnand %p3777_p8, %p3774_p6 }
  0x36   : > { %3782 = shalt.err (!%p3779_p11)
}
  0x37   : > { %s3783_s19 = scalar_lea.vmem %s4137_s22, 8192  ;;  %p3791_p13 = scmp.lt.s32.totalorder %s4137_s22, %s4137_s22 }
  0x38   : > { %p3784_p5 = scmp.ne.s32.totalorder %s4137_s22, %s3783_s19  ;;  %p3792_p3 = scmp.lt.s32.totalorder %s3783_s19, %s3783_s19 }
  0x3a   : > { %p3786_p7 = pnand %p3784_p5, %p4149_p0  ;;  %p3793_p1 = por %p3792_p3, %p3791_p13 }
  0x3c   : > { %p3787_p10 = pneg %p3786_p7 }
  0x3e   : > { %p3794_p2 = pnand %p3793_p1, %p3787_p10 }
  0x40   : > { %3797 = shalt.err (!%p3794_p2)
}
  0x41   : > { %3543 = dma.hbm_to_vmem [thread:$0]  (!%p4133_p12), %s4865_s3, 8192, %s4137_s22, [#allocation13], %s4019_s25, %s4019_s25, %s4020_s26  }
  0x42   : > { %s3798_s28 = scalar_lea.hbm %s4864_s2, 8192 }
  0x43   : > { %p3799_p6 = scmp.ne.s32.totalorder %s4864_s2, %s3798_s28  ;;  %p3805_p5 = scmp.lt.u32.totalorder %s3798_s28, %s4864_s2 }
  0x45   : > { %p3801_p8 = pnand %p3799_p6, %p4149_p0 }
  0x47   : > { %p3802_p11 = pneg %p3801_p8 }
  0x49   : > { %p3807_p7 = pnand %p3805_p5, %p3802_p11 }
  0x4b   : > { %3810 = shalt.err (!%p3807_p7)
}
  0x4c   : > { %s3811_s19 = scalar_lea.vmem %s280_s24, 8192  ;;  %p3819_p1 = scmp.lt.s32.totalorder %s280_s24, %s280_s24 }
  0x4d   : > { %p3812_p10 = scmp.ne.s32.totalorder %s280_s24, %s3811_s19  ;;  %p3820_p2 = scmp.lt.s32.totalorder %s3811_s19, %s3811_s19 }
  0x4f   : > { %p3814_p13 = pnand %p3812_p10, %p4149_p0  ;;  %p3821_p4 = por %p3820_p2, %p3819_p1 }
  0x51   : > { %p3815_p3 = pneg %p3814_p13 }
  0x53   : > { %p3822_p9 = pnand %p3821_p4, %p3815_p3 }
  0x55   : > { %3825 = shalt.err (!%p3822_p9)
}
  0x56   : > { %3540 = dma.hbm_to_vmem [thread:$0]  (!%p4133_p12), %s4864_s2, 8192, %s280_s24, [#allocation10], %s4019_s25, %s4019_s25, %s4020_s26  }
  0x57   : > { %s4021_s30 = smov [#allocation14]   ;;  %s3826_s29 = scalar_lea.hbm %s4866_s4, 64 }
  0x58   : > { %s306_s16 = sshll.u32 %s4021_s30, 4  ;;  %p3827_p4 = scmp.ne.s32.totalorder %s4866_s4, %s3826_s29  ;;  %s307_s16 = int_to_ptr.vmem [resolvable:$true] %s306_s16 }
  0x59   : > { %p3833_p8 = scmp.lt.u32.totalorder %s3826_s29, %s4866_s4 }
  0x5a   : > { %p3829_p9 = pnand %p3827_p4, %p4149_p0 }
  0x5c   : > { %p3830_p6 = pneg %p3829_p9 }
  0x5e   : > { %p3835_p11 = pnand %p3833_p8, %p3830_p6 }
  0x60   : > { %3838 = shalt.err (!%p3835_p11)
}
  0x61   : > { %s3839_s24 = scalar_lea.vmem %s307_s16, 64  ;;  %p3847_p13 = scmp.lt.s32.totalorder %s307_s16, %s307_s16 }
  0x62   : > { %p3840_p5 = scmp.ne.s32.totalorder %s307_s16, %s3839_s24  ;;  %p3848_p3 = scmp.lt.s32.totalorder %s3839_s24, %s3839_s24 }
  0x64   : > { %p3842_p7 = pnand %p3840_p5, %p4149_p0  ;;  %p3849_p1 = por %p3848_p3, %p3847_p13 }
  0x66   : > { %p3843_p10 = pneg %p3842_p7 }
  0x68   : > { %p3850_p2 = pnand %p3849_p1, %p3843_p10 }
  0x6a   : > { %3853 = shalt.err (!%p3850_p2)
}
  0x6b   : > { %3546 = dma.hbm_to_vmem [thread:$0]  (!%p4133_p12), %s4866_s4, 64, %s307_s16, [#allocation13]  }
  0x6c   : > { %s4240_s14 = sadd.s32 1, %s4014_s12   ;;  %s36_s22 = sadd.s32 1, %s4010_s11 }
  0x6d   : > { %s33_s20 = ssub.s32 %s4014_s12, %s4240_s14  ;;  %p43_p0 = scmp.ne.s32.totalorder %s4010_s11, %s4006_s10 }
  0x6e   : > { %p34_p4 = scmp.eq.s32.totalorder %s33_s20, 0  ;;  %p44_p9 = scmp.eq.s32.totalorder %s4014_s12, 0 }
  0x6f   : > { %p4886_p6 = scmp.eq.s32.totalorder %s4102_s13, 1  ;;  %p3559_p11 = scmp.lt.s32.totalorder %s4014_s12, 2 }
  0x70   : > { %s4256_s30 = scalar_select %p34_p4, %s4010_s11, %s36_s22  }
  0x71   : > { %p4250_p8 = por %p4886_p6, %p43_p0  ;;  %p45_p5 = por %p44_p9, %p43_p0 }
  0x72   : > { %s323_s27 = sand.u32 1, %s4010_s11   ;;  %s2864_s16 = sshll.u32 %s4014_s12, 10 }
  0x73   : > { %s2812_s28 = sshll.u32 %s323_s27, 6  ;;  %s4263_s21 = scalar_lea.hbm %s4862_s0, %s2864_s16 }
  0x74   : > { %s327_s23 = scalar_lea.vmem [#allocation6], %s2812_s28  ;;  %p4267_p12 = pnand %p3559_p11, %p45_p5 }
  0x75   : > { %s334_s19 = sshll.u32 %s327_s23, 4  ;;  %s4271_s25 = scalar_lea.sflag [#allocation7], %s323_s27  ;;  %s4265_s19 = int_to_ptr.vmem [resolvable:$true] %s334_s19 }
  0x76   : > { %s3854_s26 = scalar_lea.hbm %s4263_s21, 1024  ;;  %p3856_p10 = pneg %p4267_p12 }
  0x77   : > { %p3855_p7 = scmp.ne.s32.totalorder %s4263_s21, %s3854_s26  ;;  %s3859_s28 = scalar_lea.hbm %s4862_s0, 2048 }
  0x78   : > { %p3860_p1 = scmp.lt.u32.totalorder %s4263_s21, %s4862_s0  ;;  %p3861_p2 = scmp.lt.u32.totalorder %s3859_s28, %s3854_s26 }
  0x79   : > { %p3857_p13 = pnand %p3856_p10, %p3855_p7  ;;  %p3863_p4 = scmp.lt.u32.totalorder %s3854_s26, %s4263_s21 }
  0x7a   : > { %p3862_p0 = por %p3861_p2, %p3860_p1 }
  0x7b   : > { %p3858_p3 = pneg %p3857_p13 }
  0x7c   : > { %p3864_p9 = por %p3863_p4, %p3862_p0 }
  0x7e   : > { %p3865_p6 = pnand %p3864_p9, %p3858_p3 }
  0x80   : > { %3868 = shalt.err (!%p3865_p6)
}
  0x81   : > { %s3869_s27 = scalar_lea.vmem %s4265_s19, 1024  ;;  %s4022_s18 = smov [#allocation6]  }
  0x82   : > { %p3870_p11 = scmp.ne.s32.totalorder %s4265_s19, %s3869_s27  ;;  %s3874_s23 = sshll.u32 %s4022_s18, 4  ;;  %s3875_s23 = int_to_ptr.vmem [resolvable:$false] %s3874_s23 }
  0x83   : > { %s3876_s22 = scalar_lea.vmem %s3875_s23, 2048  ;;  %p3877_p13 = scmp.lt.s32.totalorder %s4265_s19, %s3875_s23 }
  0x84   : > { %p3872_p5 = pnand %p3870_p11, %p3856_p10  ;;  %p3878_p1 = scmp.lt.s32.totalorder %s3876_s22, %s3869_s27 }
  0x86   : > { %p3873_p7 = pneg %p3872_p5  ;;  %p3879_p2 = por %p3878_p1, %p3877_p13 }
  0x88   : > { %p3880_p0 = pnand %p3879_p2, %p3873_p7 }
  0x8a   : > { %3883 = shalt.err (!%p3880_p0)
}
  0x8b   : > { %s4023_s26 = smov 128   ;;  %s4024_s20 = smov 8  }
  0x8c   : > { %3550 = dma.hbm_to_vmem [thread:$0]  (!%p4267_p12), %s4263_s21, 1024, %s4265_s19, %s4271_s25, %s4023_s26, %s4023_s26, %s4024_s20  }
  0x8d   : > { %p4889_p10 = scmp.ne.s32.totalorder %s4883_s17, 0 }
  0x8e   : > { %s4302_s28 = sand.u32 (!%p4889_p10), 1, %s4006_s10   ;;  %p4890_p3 = scmp.ne.s32.totalorder (!%p4889_p10), %s4880_s15, 0 }
  0x8f   : > { %346 = sbr.rel (%p4889_p10) target bundleno = 2442 (0x98a), region = 48  ;;  %s2816_s16 = sshll.u32 (!%p4889_p10), %s4302_s28, 6 }
  0x90   : > { %s349_s29 = scalar_lea.sflag (!%p4889_p10), [#allocation7], %s4302_s28  ;;  %s4306_s27 = scalar_lea.vmem (!%p4889_p10), [#allocation6], %s2816_s16 }
  0x96   : > { %3981 = dma.done.wait (%p4890_p3), %s349_s29, 1024  }
  0x97   : > { %3983 = vsyncadd (%p4890_p3), %s349_s29, 4294966272  ;;  %p4891_p12 = scmp.eq.s32.totalorder %s4102_s13, 0 }
  0x99   : > { %3985 = dma.done.wait (%p4891_p12), [#allocation10], 16384   ;;  %p4892_p4 = pmov %p4891_p12 }
  0x9b   : > { %3987 = vsyncadd (%p4892_p4), [#allocation10], 4294950912  ;;  %p4893_p9 = pmov %p4892_p4 }
  0x9c   : > { %p4894_p6 = pmov %p4892_p4 }
  0x9d   : > { %3989 = dma.done.wait (%p4893_p9), [#allocation13], 8256  }
  0x9e   : > { %3991 = vsyncadd (%p4894_p6), [#allocation13], 4294959040  ;;  %s4320_s17 = scalar_lea.vmem [#allocation15], %s2816_s16  ;;  %p4895_p11 = scmp.ne.s32.totalorder %s4102_s13, 0 }
  0x9f   : > { %v409_v0 = vld [vmem:[#allocation11] sm:$0xff] (!%p4895_p11)  ;;  %v410_v2 = vld [vmem:[#allocation11 + $0x8] sm:$0xff] (!%p4895_p11)  ;;  %v411_v6 = vld [vmem:[#allocation11 + $0x10] sm:$0xff] (!%p4895_p11) }
  0xa0   : > { %408 = sbr.rel (%p4895_p11) target bundleno = 226 (0xe2), region = 72  ;;  %v473_v1 = vld [vmem:[#allocation12] sm:$0xff] (!%p4895_p11)  ;;  %v601_v3 = vmul.f32 (!%p4895_p11), 2.0, %v409_v0  ;;  %v474_v4 = vld [vmem:[#allocation12 + $0x8] sm:$0xff] (!%p4895_p11)  ;;  %v602_v5 = vmul.f32 (!%p4895_p11), 2.0, %v410_v2  ;;  %v475_v7 = vld [vmem:[#allocation12 + $0x10] sm:$0xff] (!%p4895_p11) }
  0xa1   : > { %vm537_vm0 = vcmp.ge.f32.partialorder (!%p4895_p11), %v473_v1, 0.5  ;;  %vm538_vm1 = vcmp.ge.f32.partialorder (!%p4895_p11), %v474_v4, 0.5  ;;  %vm539_vm2 = vcmp.ge.f32.partialorder (!%p4895_p11), %v475_v7, 0.5  ;;  %v603_v8 = vmul.f32 (!%p4895_p11), 2.0, %v411_v6  ;;  %v412_v9 = vld [vmem:[#allocation11 + $0x18] sm:$0xff] (!%p4895_p11)  ;;  %v413_v11 = vld [vmem:[#allocation11 + $0x20] sm:$0xff] (!%p4895_p11) }
  0xa2   : > { %v476_v10 = vld [vmem:[#allocation12 + $0x18] sm:$0xff] (!%p4895_p11)  ;;  %v665_v12 = vsel (!%p4895_p11), %vm537_vm0, %v601_v3, 0.0  ;;  %v666_v13 = vsel (!%p4895_p11), %vm538_vm1, %v602_v5, 0.0  ;;  %v604_v14 = vmul.f32 (!%p4895_p11), 2.0, %v412_v9  ;;  %v477_v15 = vld [vmem:[#allocation12 + $0x20] sm:$0xff] (!%p4895_p11)  ;;  %v414_v16 = vld [vmem:[#allocation11 + $0x28] sm:$0xff] (!%p4895_p11) }
  0xa3   : > { %vm540_vm3 = vcmp.ge.f32.partialorder (!%p4895_p11), %v476_v10, 0.5  ;;  %729 = vst [vmem:[#allocation4] sm:$0xff] (!%p4895_p11), %v665_v12  ;;  %730 = vst [vmem:[#allocation4 + $0x8] sm:$0xff] (!%p4895_p11), %v666_v13  ;;  %v667_v17 = vsel (!%p4895_p11), %vm539_vm2, %v603_v8, 0.0  ;;  %vm541_vm4 = vcmp.ge.f32.partialorder (!%p4895_p11), %v477_v15, 0.5  ;;  %v605_v18 = vmul.f32 (!%p4895_p11), 2.0, %v413_v11 }
  0xa4   : > { %v478_v19 = vld [vmem:[#allocation12 + $0x28] sm:$0xff] (!%p4895_p11)  ;;  %v606_v20 = vmul.f32 (!%p4895_p11), 2.0, %v414_v16  ;;  %v415_v21 = vld [vmem:[#allocation11 + $0x30] sm:$0xff] (!%p4895_p11)  ;;  %731 = vst [vmem:[#allocation4 + $0x10] sm:$0xff] (!%p4895_p11), %v667_v17  ;;  %v668_v22 = vsel (!%p4895_p11), %vm540_vm3, %v604_v14, 0.0  ;;  %v416_v25 = vld [vmem:[#allocation11 + $0x38] sm:$0xff] (!%p4895_p11) }
  0xa5   : > { %vm542_vm5 = vcmp.ge.f32.partialorder (!%p4895_p11), %v478_v19, 0.5  ;;  %v479_v23 = vld [vmem:[#allocation12 + $0x30] sm:$0xff] (!%p4895_p11)  ;;  %v607_v24 = vmul.f32 (!%p4895_p11), 2.0, %v415_v21  ;;  %v480_v26 = vld [vmem:[#allocation12 + $0x38] sm:$0xff] (!%p4895_p11)  ;;  %732 = vst [vmem:[#allocation4 + $0x18] sm:$0xff] (!%p4895_p11), %v668_v22  ;;  %v669_v27 = vsel (!%p4895_p11), %vm541_vm4, %v605_v18, 0.0 }
  0xa6   : > { %v670_v28 = vsel (!%p4895_p11), %vm542_vm5, %v606_v20, 0.0  ;;  %vm543_vm6 = vcmp.ge.f32.partialorder (!%p4895_p11), %v479_v23, 0.5  ;;  %vm544_vm7 = vcmp.ge.f32.partialorder (!%p4895_p11), %v480_v26, 0.5  ;;  %v417_v29 = vld [vmem:[#allocation11 + $0x40] sm:$0xff] (!%p4895_p11)  ;;  %733 = vst [vmem:[#allocation4 + $0x20] sm:$0xff] (!%p4895_p11), %v669_v27  ;;  %v608_v32 = vmul.f32 (!%p4895_p11), 2.0, %v416_v25 }
  0xa7   : > { %v481_v30 = vld [vmem:[#allocation12 + $0x40] sm:$0xff]  ;;  %734 = vst [vmem:[#allocation4 + $0x28] sm:$0xff] %v670_v28  ;;  %v671_v31 = vsel %vm543_vm6, %v607_v24, 0.0  ;;  %v609_v33 = vmul.f32 2.0, %v417_v29  ;;  %v418_v34 = vld [vmem:[#allocation11 + $0x48] sm:$0xff]  ;;  %v419_v37 = vld [vmem:[#allocation11 + $0x50] sm:$0xff] }
  0xa8   : > { %vm545_vm8 = vcmp.ge.f32.partialorder %v481_v30, 0.5  ;;  %v482_v35 = vld [vmem:[#allocation12 + $0x48] sm:$0xff]  ;;  %735 = vst [vmem:[#allocation4 + $0x30] sm:$0xff] %v671_v31  ;;  %v610_v36 = vmul.f32 2.0, %v418_v34  ;;  %v483_v38 = vld [vmem:[#allocation12 + $0x50] sm:$0xff]  ;;  %v420_v39 = vld [vmem:[#allocation11 + $0x58] sm:$0xff] }
  0xa9   : > { %vm546_vm9 = vcmp.ge.f32.partialorder %v482_v35, 0.5  ;;  %v672_v40 = vsel %vm544_vm7, %v608_v32, 0.0  ;;  %v673_v41 = vsel %vm545_vm8, %v609_v33, 0.0  ;;  %vm547_vm10 = vcmp.ge.f32.partialorder %v483_v38, 0.5  ;;  %v484_v43 = vld [vmem:[#allocation12 + $0x58] sm:$0xff]  ;;  %v421_v44 = vld [vmem:[#allocation11 + $0x60] sm:$0xff] }
  0xaa   : > { %v611_v42 = vmul.f32 2.0, %v419_v37  ;;  %736 = vst [vmem:[#allocation4 + $0x38] sm:$0xff] %v672_v40  ;;  %737 = vst [vmem:[#allocation4 + $0x40] sm:$0xff] %v673_v41  ;;  %v674_v45 = vsel %vm546_vm9, %v610_v36, 0.0  ;;  %vm548_vm11 = vcmp.ge.f32.partialorder %v484_v43, 0.5  ;;  %v612_v46 = vmul.f32 2.0, %v420_v39 }
  0xab   : > { %v485_v47 = vld [vmem:[#allocation12 + $0x60] sm:$0xff]  ;;  %v613_v48 = vmul.f32 2.0, %v421_v44  ;;  %v422_v49 = vld [vmem:[#allocation11 + $0x68] sm:$0xff]  ;;  %738 = vst [vmem:[#allocation4 + $0x48] sm:$0xff] %v674_v45  ;;  %v423_v53 = vld [vmem:[#allocation11 + $0x70] sm:$0xff] }
  0xac   : > { %v675_v50 = vsel %vm547_vm10, %v611_v42, 0.0  ;;  %vm549_vm12 = vcmp.ge.f32.partialorder %v485_v47, 0.5  ;;  %v486_v51 = vld [vmem:[#allocation12 + $0x68] sm:$0xff]  ;;  %v614_v52 = vmul.f32 2.0, %v422_v49  ;;  %v487_v54 = vld [vmem:[#allocation12 + $0x70] sm:$0xff]  ;;  %v676_v55 = vsel %vm548_vm11, %v612_v46, 0.0 }
  0xad   : > { %739 = vst [vmem:[#allocation4 + $0x50] sm:$0xff] %v675_v50  ;;  %v677_v56 = vsel %vm549_vm12, %v613_v48, 0.0  ;;  %vm550_vm13 = vcmp.ge.f32.partialorder %v486_v51, 0.5  ;;  %vm551_vm14 = vcmp.ge.f32.partialorder %v487_v54, 0.5  ;;  %v424_v57 = vld [vmem:[#allocation11 + $0x78] sm:$0xff]  ;;  %740 = vst [vmem:[#allocation4 + $0x58] sm:$0xff] %v676_v55 }
  0xae   : > { %v488_v58 = vld [vmem:[#allocation12 + $0x78] sm:$0xff]  ;;  %741 = vst [vmem:[#allocation4 + $0x60] sm:$0xff] %v677_v56  ;;  %v678_v59 = vsel %vm550_vm13, %v614_v52, 0.0  ;;  %v615_v60 = vmul.f32 2.0, %v423_v53  ;;  %v616_v61 = vmul.f32 2.0, %v424_v57  ;;  %v425_v62 = vld [vmem:[#allocation11 + $0x80] sm:$0xff] }
  0xaf   : > { %vm552_vm15 = vcmp.ge.f32.partialorder %v488_v58, 0.5  ;;  %v489_v63 = vld [vmem:[#allocation12 + $0x80] sm:$0xff]  ;;  %742 = vst [vmem:[#allocation4 + $0x68] sm:$0xff] %v678_v59  ;;  %v617_v0 = vmul.f32 2.0, %v425_v62  ;;  %v426_v1 = vld [vmem:[#allocation11 + $0x88] sm:$0xff]  ;;  %v427_v3 = vld [vmem:[#allocation11 + $0x90] sm:$0xff] }
  0xb0   : > { %vm553_vm0 = vcmp.ge.f32.partialorder %v489_v63, 0.5  ;;  %v490_v2 = vld [vmem:[#allocation12 + $0x88] sm:$0xff]  ;;  %v679_v4 = vsel %vm551_vm14, %v615_v60, 0.0  ;;  %v680_v5 = vsel %vm552_vm15, %v616_v61, 0.0  ;;  %v618_v6 = vmul.f32 2.0, %v426_v1  ;;  %v491_v7 = vld [vmem:[#allocation12 + $0x90] sm:$0xff] }
  0xb1   : > { %vm554_vm1 = vcmp.ge.f32.partialorder %v490_v2, 0.5  ;;  %v428_v8 = vld [vmem:[#allocation11 + $0x98] sm:$0xff]  ;;  %743 = vst [vmem:[#allocation4 + $0x70] sm:$0xff] %v679_v4  ;;  %744 = vst [vmem:[#allocation4 + $0x78] sm:$0xff] %v680_v5  ;;  %v681_v9 = vsel %vm553_vm0, %v617_v0, 0.0  ;;  %vm555_vm2 = vcmp.ge.f32.partialorder %v491_v7, 0.5 }
  0xb2   : > { %v619_v10 = vmul.f32 2.0, %v427_v3  ;;  %v492_v11 = vld [vmem:[#allocation12 + $0x98] sm:$0xff]  ;;  %v620_v12 = vmul.f32 2.0, %v428_v8  ;;  %v429_v13 = vld [vmem:[#allocation11 + $0xa0] sm:$0xff]  ;;  %745 = vst [vmem:[#allocation4 + $0x80] sm:$0xff] %v681_v9  ;;  %v682_v14 = vsel %vm554_vm1, %v618_v6, 0.0 }
  0xb3   : > { %vm556_vm3 = vcmp.ge.f32.partialorder %v492_v11, 0.5  ;;  %v493_v15 = vld [vmem:[#allocation12 + $0xa0] sm:$0xff]  ;;  %v621_v16 = vmul.f32 2.0, %v429_v13  ;;  %v430_v17 = vld [vmem:[#allocation11 + $0xa8] sm:$0xff]  ;;  %746 = vst [vmem:[#allocation4 + $0x88] sm:$0xff] %v682_v14  ;;  %v431_v21 = vld [vmem:[#allocation11 + $0xb0] sm:$0xff] }
  0xb4   : > { %v494_v18 = vld [vmem:[#allocation12 + $0xa8] sm:$0xff]  ;;  %v683_v19 = vsel %vm555_vm2, %v619_v10, 0.0  ;;  %v684_v20 = vsel %vm556_vm3, %v620_v12, 0.0  ;;  %vm557_vm4 = vcmp.ge.f32.partialorder %v493_v15, 0.5  ;;  %v495_v22 = vld [vmem:[#allocation12 + $0xb0] sm:$0xff]  ;;  %v622_v24 = vmul.f32 2.0, %v430_v17 }
  0xb5   : > { %vm558_vm5 = vcmp.ge.f32.partialorder %v494_v18, 0.5  ;;  %747 = vst [vmem:[#allocation4 + $0x90] sm:$0xff] %v683_v19  ;;  %748 = vst [vmem:[#allocation4 + $0x98] sm:$0xff] %v684_v20  ;;  %v685_v23 = vsel %vm557_vm4, %v621_v16, 0.0  ;;  %vm559_vm6 = vcmp.ge.f32.partialorder %v495_v22, 0.5  ;;  %v623_v25 = vmul.f32 2.0, %v431_v21 }
  0xb6   : > { %v432_v26 = vld [vmem:[#allocation11 + $0xb8] sm:$0xff]  ;;  %749 = vst [vmem:[#allocation4 + $0xa0] sm:$0xff] %v685_v23  ;;  %v433_v29 = vld [vmem:[#allocation11 + $0xc0] sm:$0xff]  ;;  %v434_v31 = vld [vmem:[#allocation11 + $0xc8] sm:$0xff]  ;;  %v686_v32 = vsel %vm558_vm5, %v622_v24, 0.0 }
  0xb7   : > { %v496_v27 = vld [vmem:[#allocation12 + $0xb8] sm:$0xff]  ;;  %v624_v28 = vmul.f32 2.0, %v432_v26  ;;  %v497_v30 = vld [vmem:[#allocation12 + $0xc0] sm:$0xff]  ;;  %v687_v33 = vsel %vm559_vm6, %v623_v25, 0.0  ;;  %v625_v34 = vmul.f32 2.0, %v433_v29  ;;  %v498_v35 = vld [vmem:[#allocation12 + $0xc8] sm:$0xff] }
  0xb8   : > { %vm560_vm7 = vcmp.ge.f32.partialorder %v496_v27, 0.5  ;;  %vm561_vm8 = vcmp.ge.f32.partialorder %v497_v30, 0.5  ;;  %v435_v36 = vld [vmem:[#allocation11 + $0xd0] sm:$0xff]  ;;  %750 = vst [vmem:[#allocation4 + $0xa8] sm:$0xff] %v686_v32  ;;  %751 = vst [vmem:[#allocation4 + $0xb0] sm:$0xff] %v687_v33  ;;  %vm562_vm9 = vcmp.ge.f32.partialorder %v498_v35, 0.5 }
  0xb9   : > { %v688_v37 = vsel %vm560_vm7, %v624_v28, 0.0  ;;  %v626_v38 = vmul.f32 2.0, %v434_v31  ;;  %v499_v39 = vld [vmem:[#allocation12 + $0xd0] sm:$0xff]  ;;  %v627_v40 = vmul.f32 2.0, %v435_v36  ;;  %v436_v41 = vld [vmem:[#allocation11 + $0xd8] sm:$0xff]  ;;  %v689_v42 = vsel %vm561_vm8, %v625_v34, 0.0 }
  0xba   : > { %752 = vst [vmem:[#allocation4 + $0xb8] sm:$0xff] %v688_v37  ;;  %vm563_vm10 = vcmp.ge.f32.partialorder %v499_v39, 0.5  ;;  %v500_v43 = vld [vmem:[#allocation12 + $0xd8] sm:$0xff]  ;;  %v628_v44 = vmul.f32 2.0, %v436_v41  ;;  %v437_v45 = vld [vmem:[#allocation11 + $0xe0] sm:$0xff]  ;;  %753 = vst [vmem:[#allocation4 + $0xc0] sm:$0xff] %v689_v42 }
  0xbb   : > { %v501_v46 = vld [vmem:[#allocation12 + $0xe0] sm:$0xff]  ;;  %v690_v47 = vsel %vm562_vm9, %v626_v38, 0.0  ;;  %v691_v48 = vsel %vm563_vm10, %v627_v40, 0.0  ;;  %vm564_vm11 = vcmp.ge.f32.partialorder %v500_v43, 0.5  ;;  %v438_v49 = vld [vmem:[#allocation11 + $0xe8] sm:$0xff]  ;;  %v629_v52 = vmul.f32 2.0, %v437_v45 }
  0xbc   : > { %vm565_vm12 = vcmp.ge.f32.partialorder %v501_v46, 0.5  ;;  %v502_v50 = vld [vmem:[#allocation12 + $0xe8] sm:$0xff]  ;;  %754 = vst [vmem:[#allocation4 + $0xc8] sm:$0xff] %v690_v47  ;;  %755 = vst [vmem:[#allocation4 + $0xd0] sm:$0xff] %v691_v48  ;;  %v692_v51 = vsel %vm564_vm11, %v628_v44, 0.0  ;;  %v630_v53 = vmul.f32 2.0, %v438_v49 }
  0xbd   : > { %vm566_vm13 = vcmp.ge.f32.partialorder %v502_v50, 0.5  ;;  %v439_v54 = vld [vmem:[#allocation11 + $0xf0] sm:$0xff]  ;;  %756 = vst [vmem:[#allocation4 + $0xd8] sm:$0xff] %v692_v51  ;;  %v440_v57 = vld [vmem:[#allocation11 + $0xf8] sm:$0xff]  ;;  %v441_v59 = vld [vmem:[#allocation11 + $0x100] sm:$0xff]  ;;  %v693_v60 = vsel %vm565_vm12, %v629_v52, 0.0 }
  0xbe   : > { %v503_v55 = vld [vmem:[#allocation12 + $0xf0] sm:$0xff]  ;;  %v631_v56 = vmul.f32 2.0, %v439_v54  ;;  %v504_v58 = vld [vmem:[#allocation12 + $0xf8] sm:$0xff]  ;;  %v694_v61 = vsel %vm566_vm13, %v630_v53, 0.0  ;;  %v632_v62 = vmul.f32 2.0, %v440_v57  ;;  %v505_v63 = vld [vmem:[#allocation12 + $0x100] sm:$0xff] }
  0xbf   : > { %vm567_vm14 = vcmp.ge.f32.partialorder %v503_v55, 0.5  ;;  %vm568_vm15 = vcmp.ge.f32.partialorder %v504_v58, 0.5  ;;  %v442_v0 = vld [vmem:[#allocation11 + $0x108] sm:$0xff]  ;;  %757 = vst [vmem:[#allocation4 + $0xe0] sm:$0xff] %v693_v60  ;;  %758 = vst [vmem:[#allocation4 + $0xe8] sm:$0xff] %v694_v61  ;;  %vm569_vm0 = vcmp.ge.f32.partialorder %v505_v63, 0.5 }
  0xc0   : > { %v695_v1 = vsel %vm567_vm14, %v631_v56, 0.0  ;;  %v633_v2 = vmul.f32 2.0, %v441_v59  ;;  %v506_v3 = vld [vmem:[#allocation12 + $0x108] sm:$0xff]  ;;  %v634_v4 = vmul.f32 2.0, %v442_v0  ;;  %v443_v5 = vld [vmem:[#allocation11 + $0x110] sm:$0xff]  ;;  %v696_v6 = vsel %vm568_vm15, %v632_v62, 0.0 }
  0xc1   : > { %759 = vst [vmem:[#allocation4 + $0xf0] sm:$0xff] %v695_v1  ;;  %vm570_vm1 = vcmp.ge.f32.partialorder %v506_v3, 0.5  ;;  %v507_v7 = vld [vmem:[#allocation12 + $0x110] sm:$0xff]  ;;  %v635_v8 = vmul.f32 2.0, %v443_v5  ;;  %v444_v9 = vld [vmem:[#allocation11 + $0x118] sm:$0xff]  ;;  %760 = vst [vmem:[#allocation4 + $0xf8] sm:$0xff] %v696_v6 }
  0xc2   : > { %v508_v10 = vld [vmem:[#allocation12 + $0x118] sm:$0xff]  ;;  %v697_v11 = vsel %vm569_vm0, %v633_v2, 0.0  ;;  %v698_v12 = vsel %vm570_vm1, %v634_v4, 0.0  ;;  %vm571_vm2 = vcmp.ge.f32.partialorder %v507_v7, 0.5  ;;  %v445_v13 = vld [vmem:[#allocation11 + $0x120] sm:$0xff]  ;;  %v636_v16 = vmul.f32 2.0, %v444_v9 }
  0xc3   : > { %vm572_vm3 = vcmp.ge.f32.partialorder %v508_v10, 0.5  ;;  %v509_v14 = vld [vmem:[#allocation12 + $0x120] sm:$0xff]  ;;  %761 = vst [vmem:[#allocation4 + $0x100] sm:$0xff] %v697_v11  ;;  %762 = vst [vmem:[#allocation4 + $0x108] sm:$0xff] %v698_v12  ;;  %v699_v15 = vsel %vm571_vm2, %v635_v8, 0.0  ;;  %v637_v17 = vmul.f32 2.0, %v445_v13 }
  0xc4   : > { %vm573_vm4 = vcmp.ge.f32.partialorder %v509_v14, 0.5  ;;  %v446_v18 = vld [vmem:[#allocation11 + $0x128] sm:$0xff]  ;;  %763 = vst [vmem:[#allocation4 + $0x110] sm:$0xff] %v699_v15  ;;  %v447_v21 = vld [vmem:[#allocation11 + $0x130] sm:$0xff]  ;;  %v448_v23 = vld [vmem:[#allocation11 + $0x138] sm:$0xff]  ;;  %v700_v24 = vsel %vm572_vm3, %v636_v16, 0.0 }
  0xc5   : > { %v510_v19 = vld [vmem:[#allocation12 + $0x128] sm:$0xff]  ;;  %v638_v20 = vmul.f32 2.0, %v446_v18  ;;  %v511_v22 = vld [vmem:[#allocation12 + $0x130] sm:$0xff]  ;;  %v701_v25 = vsel %vm573_vm4, %v637_v17, 0.0  ;;  %v639_v26 = vmul.f32 2.0, %v447_v21  ;;  %v512_v27 = vld [vmem:[#allocation12 + $0x138] sm:$0xff] }
  0xc6   : > { %vm574_vm5 = vcmp.ge.f32.partialorder %v510_v19, 0.5  ;;  %vm575_vm6 = vcmp.ge.f32.partialorder %v511_v22, 0.5  ;;  %v449_v28 = vld [vmem:[#allocation11 + $0x140] sm:$0xff]  ;;  %764 = vst [vmem:[#allocation4 + $0x118] sm:$0xff] %v700_v24  ;;  %765 = vst [vmem:[#allocation4 + $0x120] sm:$0xff] %v701_v25  ;;  %vm576_vm7 = vcmp.ge.f32.partialorder %v512_v27, 0.5 }
  0xc7   : > { %v702_v29 = vsel %vm574_vm5, %v638_v20, 0.0  ;;  %v640_v30 = vmul.f32 2.0, %v448_v23  ;;  %v513_v31 = vld [vmem:[#allocation12 + $0x140] sm:$0xff]  ;;  %v641_v32 = vmul.f32 2.0, %v449_v28  ;;  %v450_v33 = vld [vmem:[#allocation11 + $0x148] sm:$0xff]  ;;  %v703_v34 = vsel %vm575_vm6, %v639_v26, 0.0 }
  0xc8   : > { %766 = vst [vmem:[#allocation4 + $0x128] sm:$0xff] %v702_v29  ;;  %vm577_vm8 = vcmp.ge.f32.partialorder %v513_v31, 0.5  ;;  %v514_v35 = vld [vmem:[#allocation12 + $0x148] sm:$0xff]  ;;  %v642_v36 = vmul.f32 2.0, %v450_v33  ;;  %v451_v37 = vld [vmem:[#allocation11 + $0x150] sm:$0xff]  ;;  %767 = vst [vmem:[#allocation4 + $0x130] sm:$0xff] %v703_v34 }
  0xc9   : > { %v515_v38 = vld [vmem:[#allocation12 + $0x150] sm:$0xff]  ;;  %v704_v39 = vsel %vm576_vm7, %v640_v30, 0.0  ;;  %v705_v40 = vsel %vm577_vm8, %v641_v32, 0.0  ;;  %vm578_vm9 = vcmp.ge.f32.partialorder %v514_v35, 0.5  ;;  %v452_v41 = vld [vmem:[#allocation11 + $0x158] sm:$0xff]  ;;  %v643_v44 = vmul.f32 2.0, %v451_v37 }
  0xca   : > { %vm579_vm10 = vcmp.ge.f32.partialorder %v515_v38, 0.5  ;;  %v516_v42 = vld [vmem:[#allocation12 + $0x158] sm:$0xff]  ;;  %768 = vst [vmem:[#allocation4 + $0x138] sm:$0xff] %v704_v39  ;;  %769 = vst [vmem:[#allocation4 + $0x140] sm:$0xff] %v705_v40  ;;  %v706_v43 = vsel %vm578_vm9, %v642_v36, 0.0  ;;  %v644_v45 = vmul.f32 2.0, %v452_v41 }
  0xcb   : > { %vm580_vm11 = vcmp.ge.f32.partialorder %v516_v42, 0.5  ;;  %v453_v46 = vld [vmem:[#allocation11 + $0x160] sm:$0xff]  ;;  %770 = vst [vmem:[#allocation4 + $0x148] sm:$0xff] %v706_v43  ;;  %v454_v49 = vld [vmem:[#allocation11 + $0x168] sm:$0xff]  ;;  %v455_v51 = vld [vmem:[#allocation11 + $0x170] sm:$0xff]  ;;  %v707_v52 = vsel %vm579_vm10, %v643_v44, 0.0 }
  0xcc   : > { %v517_v47 = vld [vmem:[#allocation12 + $0x160] sm:$0xff]  ;;  %v645_v48 = vmul.f32 2.0, %v453_v46  ;;  %v518_v50 = vld [vmem:[#allocation12 + $0x168] sm:$0xff]  ;;  %v708_v53 = vsel %vm580_vm11, %v644_v45, 0.0  ;;  %v646_v54 = vmul.f32 2.0, %v454_v49  ;;  %v519_v55 = vld [vmem:[#allocation12 + $0x170] sm:$0xff] }
  0xcd   : > { %vm581_vm12 = vcmp.ge.f32.partialorder %v517_v47, 0.5  ;;  %vm582_vm13 = vcmp.ge.f32.partialorder %v518_v50, 0.5  ;;  %v456_v56 = vld [vmem:[#allocation11 + $0x178] sm:$0xff]  ;;  %771 = vst [vmem:[#allocation4 + $0x150] sm:$0xff] %v707_v52  ;;  %772 = vst [vmem:[#allocation4 + $0x158] sm:$0xff] %v708_v53  ;;  %vm583_vm14 = vcmp.ge.f32.partialorder %v519_v55, 0.5 }
  0xce   : > { %v709_v57 = vsel %vm581_vm12, %v645_v48, 0.0  ;;  %v647_v58 = vmul.f32 2.0, %v455_v51  ;;  %v520_v59 = vld [vmem:[#allocation12 + $0x178] sm:$0xff]  ;;  %v648_v60 = vmul.f32 2.0, %v456_v56  ;;  %v457_v61 = vld [vmem:[#allocation11 + $0x180] sm:$0xff]  ;;  %v710_v62 = vsel %vm582_vm13, %v646_v54, 0.0 }
  0xcf   : > { %773 = vst [vmem:[#allocation4 + $0x160] sm:$0xff] %v709_v57  ;;  %vm584_vm15 = vcmp.ge.f32.partialorder %v520_v59, 0.5  ;;  %v521_v63 = vld [vmem:[#allocation12 + $0x180] sm:$0xff]  ;;  %v649_v0 = vmul.f32 2.0, %v457_v61  ;;  %v458_v1 = vld [vmem:[#allocation11 + $0x188] sm:$0xff]  ;;  %774 = vst [vmem:[#allocation4 + $0x168] sm:$0xff] %v710_v62 }
  0xd0   : > { %v522_v2 = vld [vmem:[#allocation12 + $0x188] sm:$0xff]  ;;  %v711_v3 = vsel %vm583_vm14, %v647_v58, 0.0  ;;  %v712_v4 = vsel %vm584_vm15, %v648_v60, 0.0  ;;  %vm585_vm0 = vcmp.ge.f32.partialorder %v521_v63, 0.5  ;;  %v459_v5 = vld [vmem:[#allocation11 + $0x190] sm:$0xff]  ;;  %v650_v8 = vmul.f32 2.0, %v458_v1 }
  0xd1   : > { %vm586_vm1 = vcmp.ge.f32.partialorder %v522_v2, 0.5  ;;  %v523_v6 = vld [vmem:[#allocation12 + $0x190] sm:$0xff]  ;;  %775 = vst [vmem:[#allocation4 + $0x170] sm:$0xff] %v711_v3  ;;  %776 = vst [vmem:[#allocation4 + $0x178] sm:$0xff] %v712_v4  ;;  %v713_v7 = vsel %vm585_vm0, %v649_v0, 0.0  ;;  %v651_v9 = vmul.f32 2.0, %v459_v5 }
  0xd2   : > { %vm587_vm2 = vcmp.ge.f32.partialorder %v523_v6, 0.5  ;;  %v460_v10 = vld [vmem:[#allocation11 + $0x198] sm:$0xff]  ;;  %777 = vst [vmem:[#allocation4 + $0x180] sm:$0xff] %v713_v7  ;;  %v461_v13 = vld [vmem:[#allocation11 + $0x1a0] sm:$0xff]  ;;  %v462_v15 = vld [vmem:[#allocation11 + $0x1a8] sm:$0xff]  ;;  %v714_v16 = vsel %vm586_vm1, %v650_v8, 0.0 }
  0xd3   : > { %v524_v11 = vld [vmem:[#allocation12 + $0x198] sm:$0xff]  ;;  %v652_v12 = vmul.f32 2.0, %v460_v10  ;;  %v525_v14 = vld [vmem:[#allocation12 + $0x1a0] sm:$0xff]  ;;  %v715_v17 = vsel %vm587_vm2, %v651_v9, 0.0  ;;  %v653_v18 = vmul.f32 2.0, %v461_v13  ;;  %v526_v19 = vld [vmem:[#allocation12 + $0x1a8] sm:$0xff] }
  0xd4   : > { %vm588_vm3 = vcmp.ge.f32.partialorder %v524_v11, 0.5  ;;  %vm589_vm4 = vcmp.ge.f32.partialorder %v525_v14, 0.5  ;;  %v463_v20 = vld [vmem:[#allocation11 + $0x1b0] sm:$0xff]  ;;  %778 = vst [vmem:[#allocation4 + $0x188] sm:$0xff] %v714_v16  ;;  %779 = vst [vmem:[#allocation4 + $0x190] sm:$0xff] %v715_v17  ;;  %vm590_vm5 = vcmp.ge.f32.partialorder %v526_v19, 0.5 }
  0xd5   : > { %v716_v21 = vsel %vm588_vm3, %v652_v12, 0.0  ;;  %v654_v22 = vmul.f32 2.0, %v462_v15  ;;  %v527_v23 = vld [vmem:[#allocation12 + $0x1b0] sm:$0xff]  ;;  %v655_v24 = vmul.f32 2.0, %v463_v20  ;;  %v464_v25 = vld [vmem:[#allocation11 + $0x1b8] sm:$0xff]  ;;  %v717_v26 = vsel %vm589_vm4, %v653_v18, 0.0 }
  0xd6   : > { %780 = vst [vmem:[#allocation4 + $0x198] sm:$0xff] %v716_v21  ;;  %vm591_vm6 = vcmp.ge.f32.partialorder %v527_v23, 0.5  ;;  %v528_v27 = vld [vmem:[#allocation12 + $0x1b8] sm:$0xff]  ;;  %v656_v28 = vmul.f32 2.0, %v464_v25  ;;  %v465_v29 = vld [vmem:[#allocation11 + $0x1c0] sm:$0xff]  ;;  %781 = vst [vmem:[#allocation4 + $0x1a0] sm:$0xff] %v717_v26 }
  0xd7   : > { %v529_v30 = vld [vmem:[#allocation12 + $0x1c0] sm:$0xff]  ;;  %v718_v31 = vsel %vm590_vm5, %v654_v22, 0.0  ;;  %v719_v32 = vsel %vm591_vm6, %v655_v24, 0.0  ;;  %vm592_vm7 = vcmp.ge.f32.partialorder %v528_v27, 0.5  ;;  %v466_v33 = vld [vmem:[#allocation11 + $0x1c8] sm:$0xff]  ;;  %v657_v36 = vmul.f32 2.0, %v465_v29 }
  0xd8   : > { %vm593_vm8 = vcmp.ge.f32.partialorder %v529_v30, 0.5  ;;  %v530_v34 = vld [vmem:[#allocation12 + $0x1c8] sm:$0xff]  ;;  %782 = vst [vmem:[#allocation4 + $0x1a8] sm:$0xff] %v718_v31  ;;  %783 = vst [vmem:[#allocation4 + $0x1b0] sm:$0xff] %v719_v32  ;;  %v720_v35 = vsel %vm592_vm7, %v656_v28, 0.0  ;;  %v658_v37 = vmul.f32 2.0, %v466_v33 }
  0xd9   : > { %vm594_vm9 = vcmp.ge.f32.partialorder %v530_v34, 0.5  ;;  %v467_v38 = vld [vmem:[#allocation11 + $0x1d0] sm:$0xff]  ;;  %784 = vst [vmem:[#allocation4 + $0x1b8] sm:$0xff] %v720_v35  ;;  %v468_v41 = vld [vmem:[#allocation11 + $0x1d8] sm:$0xff]  ;;  %v469_v43 = vld [vmem:[#allocation11 + $0x1e0] sm:$0xff]  ;;  %v721_v44 = vsel %vm593_vm8, %v657_v36, 0.0 }
  0xda   : > { %v531_v39 = vld [vmem:[#allocation12 + $0x1d0] sm:$0xff]  ;;  %v659_v40 = vmul.f32 2.0, %v467_v38  ;;  %v532_v42 = vld [vmem:[#allocation12 + $0x1d8] sm:$0xff]  ;;  %v722_v45 = vsel %vm594_vm9, %v658_v37, 0.0  ;;  %v660_v46 = vmul.f32 2.0, %v468_v41  ;;  %v533_v47 = vld [vmem:[#allocation12 + $0x1e0] sm:$0xff] }
  0xdb   : > { %vm595_vm10 = vcmp.ge.f32.partialorder %v531_v39, 0.5  ;;  %vm596_vm11 = vcmp.ge.f32.partialorder %v532_v42, 0.5  ;;  %v470_v48 = vld [vmem:[#allocation11 + $0x1e8] sm:$0xff]  ;;  %785 = vst [vmem:[#allocation4 + $0x1c0] sm:$0xff] %v721_v44  ;;  %786 = vst [vmem:[#allocation4 + $0x1c8] sm:$0xff] %v722_v45  ;;  %vm597_vm12 = vcmp.ge.f32.partialorder %v533_v47, 0.5 }
  0xdc   : > { %v723_v49 = vsel %vm595_vm10, %v659_v40, 0.0  ;;  %v661_v50 = vmul.f32 2.0, %v469_v43  ;;  %v534_v51 = vld [vmem:[#allocation12 + $0x1e8] sm:$0xff]  ;;  %v662_v52 = vmul.f32 2.0, %v470_v48  ;;  %v471_v53 = vld [vmem:[#allocation11 + $0x1f0] sm:$0xff]  ;;  %v724_v54 = vsel %vm596_vm11, %v660_v46, 0.0 }
  0xdd   : > { %787 = vst [vmem:[#allocation4 + $0x1d0] sm:$0xff] %v723_v49  ;;  %vm598_vm13 = vcmp.ge.f32.partialorder %v534_v51, 0.5  ;;  %v535_v55 = vld [vmem:[#allocation12 + $0x1f0] sm:$0xff]  ;;  %v663_v56 = vmul.f32 2.0, %v471_v53  ;;  %v472_v57 = vld [vmem:[#allocation11 + $0x1f8] sm:$0xff]  ;;  %788 = vst [vmem:[#allocation4 + $0x1d8] sm:$0xff] %v724_v54 }
  0xde   : > { %v536_v58 = vld [vmem:[#allocation12 + $0x1f8] sm:$0xff]  ;;  %v725_v59 = vsel %vm597_vm12, %v661_v50, 0.0  ;;  %v726_v60 = vsel %vm598_vm13, %v662_v52, 0.0  ;;  %vm599_vm14 = vcmp.ge.f32.partialorder %v535_v55, 0.5  ;;  %v793_v61 = vld [vmem:[%s4867_s5] sm:$0xff]  ;;  %v664_v0 = vmul.f32 2.0, %v472_v57 }
  0xdf   : > { %vm600_vm15 = vcmp.ge.f32.partialorder %v536_v58, 0.5  ;;  %v795_v62 = vld [vmem:[%s4868_s6] sm:$0xff]  ;;  %789 = vst [vmem:[#allocation4 + $0x1e0] sm:$0xff] %v725_v59  ;;  %790 = vst [vmem:[#allocation4 + $0x1e8] sm:$0xff] %v726_v60  ;;  %v727_v63 = vsel %vm599_vm14, %v663_v56, 0.0 }
  0xe0   : > { %794 = vst [vmem:[#allocation2] sm:$0xff] %v793_v61  ;;  %796 = vst [vmem:[#allocation3] sm:$0xff] %v795_v62  ;;  %v728_v1 = vsel %vm600_vm15, %v664_v0, 0.0 }
  0xe1   : > { %791 = vst [vmem:[#allocation4 + $0x1f0] sm:$0xff] %v727_v63  ;;  %792 = vst [vmem:[#allocation4 + $0x1f8] sm:$0xff] %v728_v1 }
  0xe2 PF: > { %v806_v2 = vld [vmem:[#allocation9 + $0x8] sm:$0xff]  ;;  %v808_v4 = vld [vmem:[#allocation9 + $0x18] sm:$0xff]  ;;  %v805_v7 = vld [vmem:[#allocation9] sm:$0xff]  ;;  %v4025_v9 = vmov 0.0   ;;  %p2854_p5 = scmp.ne.s32.totalorder %s4102_s13, 1 }
  0xe3   : > { %v810_v3 = vld [vmem:[#allocation9 + $0x28] sm:$0xff]  ;;  %v812_v6 = vld [vmem:[#allocation9 + $0x38] sm:$0xff]  ;;  %v809_v8 = vld [vmem:[#allocation9 + $0x20] sm:$0xff]  ;;  %955 = vmatprep.mubr.f32.mxu0 %v4025_v9  ;;  %1068 = vmatprep.mubr.f32.mxu1 %v4025_v9 }
  0xe4   : > { %v2866_v5 = vpack.c.bf16 %v810_v3, %v806_v2  ;;  %v2898_v10 = vpack.c.bf16 %v812_v6, %v808_v4  ;;  %v2868_v11 = vpack.c.bf16 %v809_v8, %v805_v7  ;;  %v807_v12 = vld [vmem:[#allocation9 + $0x10] sm:$0xff]  ;;  %v814_v14 = vld [vmem:[#allocation9 + $0x48] sm:$0xff]  ;;  %v816_v17 = vld [vmem:[#allocation9 + $0x58] sm:$0xff] }
  0xe5   : > { %v811_v13 = vld [vmem:[#allocation9 + $0x30] sm:$0xff]  ;;  %v818_v16 = vld [vmem:[#allocation9 + $0x68] sm:$0xff]  ;;  %v820_v18 = vld [vmem:[#allocation9 + $0x78] sm:$0xff] }
  0xe6   : > { %2867 = vmatprep.subr.bf16.mxu0 %v2866_v5  ;;  %v2900_v15 = vpack.c.bf16 %v811_v13, %v807_v12  ;;  %2899 = vmatprep.subr.bf16.mxu1 %v2898_v10  ;;  %v2870_v19 = vpack.c.bf16 %v818_v16, %v814_v14  ;;  %v2902_v20 = vpack.c.bf16 %v820_v18, %v816_v17  ;;  %v813_v21 = vld [vmem:[#allocation9 + $0x40] sm:$0xff]  ;;  %v815_v23 = vld [vmem:[#allocation9 + $0x50] sm:$0xff]  ;;  %v822_v26 = vld [vmem:[#allocation9 + $0x88] sm:$0xff] }
  0xe7   : > { %2869 = vmatpush1.bf16.msra.mxu0 %v2868_v11  ;;  %v817_v22 = vld [vmem:[#allocation9 + $0x60] sm:$0xff]  ;;  %v819_v25 = vld [vmem:[#allocation9 + $0x70] sm:$0xff]  ;;  %v826_v27 = vld [vmem:[#allocation9 + $0xa8] sm:$0xff] }
  0xe8   : > { %2901 = vmatpush1.bf16.msra.mxu1 %v2900_v15  ;;  %v2872_v24 = vpack.c.bf16 %v817_v22, %v813_v21  ;;  %2871 = vmatprep.subr.bf16.mxu0 %v2870_v19  ;;  %v2904_v28 = vpack.c.bf16 %v819_v25, %v815_v23  ;;  %v2874_v29 = vpack.c.bf16 %v826_v27, %v822_v26  ;;  %v824_v30 = vld [vmem:[#allocation9 + $0x98] sm:$0xff]  ;;  %v821_v32 = vld [vmem:[#allocation9 + $0x80] sm:$0xff]  ;;  %v823_v35 = vld [vmem:[#allocation9 + $0x90] sm:$0xff] }
  0xe9   : > { %2903 = vmatprep.subr.bf16.mxu1 %v2902_v20  ;;  %v828_v31 = vld [vmem:[#allocation9 + $0xb8] sm:$0xff]  ;;  %v825_v34 = vld [vmem:[#allocation9 + $0xa0] sm:$0xff]  ;;  %v827_v36 = vld [vmem:[#allocation9 + $0xb0] sm:$0xff] }
  0xea   : > { %v2906_v33 = vpack.c.bf16 %v828_v31, %v824_v30  ;;  %v2876_v37 = vpack.c.bf16 %v825_v34, %v821_v32  ;;  %v830_v38 = vld [vmem:[#allocation9 + $0xc8] sm:$0xff]  ;;  %v832_v40 = vld [vmem:[#allocation9 + $0xd8] sm:$0xff]  ;;  %v2908_v41 = vpack.c.bf16 %v827_v36, %v823_v35  ;;  %v829_v44 = vld [vmem:[#allocation9 + $0xc0] sm:$0xff] }
  0xeb   : > { %2873 = vmatpush1.bf16.msra.mxu0 %v2872_v24  ;;  %v834_v39 = vld [vmem:[#allocation9 + $0xe8] sm:$0xff]  ;;  %v836_v43 = vld [vmem:[#allocation9 + $0xf8] sm:$0xff]  ;;  %v833_v45 = vld [vmem:[#allocation9 + $0xe0] sm:$0xff] }
  0xec   : > { %2905 = vmatpush1.bf16.msra.mxu1 %v2904_v28  ;;  %2875 = vmatprep.subr.bf16.mxu0 %v2874_v29  ;;  %v2878_v42 = vpack.c.bf16 %v834_v39, %v830_v38  ;;  %v2910_v46 = vpack.c.bf16 %v836_v43, %v832_v40  ;;  %v831_v47 = vld [vmem:[#allocation9 + $0xd0] sm:$0xff]  ;;  %v838_v49 = vld [vmem:[#allocation9 + $0x108] sm:$0xff]  ;;  %v840_v51 = vld [vmem:[#allocation9 + $0x118] sm:$0xff]  ;;  %v2880_v53 = vpack.c.bf16 %v833_v45, %v829_v44 }
  0xed   : > { %2907 = vmatprep.subr.bf16.mxu1 %v2906_v33  ;;  %v835_v48 = vld [vmem:[#allocation9 + $0xf0] sm:$0xff]  ;;  %v842_v50 = vld [vmem:[#allocation9 + $0x128] sm:$0xff]  ;;  %v844_v52 = vld [vmem:[#allocation9 + $0x138] sm:$0xff] }
  0xee   : > { %v2912_v54 = vpack.c.bf16 %v835_v48, %v831_v47  ;;  %v2882_v55 = vpack.c.bf16 %v842_v50, %v838_v49  ;;  %v837_v56 = vld [vmem:[#allocation9 + $0x100] sm:$0xff]  ;;  %v839_v58 = vld [vmem:[#allocation9 + $0x110] sm:$0xff]  ;;  %v2914_v59 = vpack.c.bf16 %v844_v52, %v840_v51  ;;  %v846_v61 = vld [vmem:[#allocation9 + $0x148] sm:$0xff] }
  0xef   : > { %2877 = vmatpush1.bf16.msra.mxu0 %v2876_v37  ;;  %v841_v57 = vld [vmem:[#allocation9 + $0x120] sm:$0xff]  ;;  %v843_v60 = vld [vmem:[#allocation9 + $0x130] sm:$0xff]  ;;  %v850_v62 = vld [vmem:[#allocation9 + $0x168] sm:$0xff] }
  0xf0   : > { %2909 = vmatpush1.bf16.msra.mxu1 %v2908_v41  ;;  %2879 = vmatprep.subr.bf16.mxu0 %v2878_v42  ;;  %v848_v63 = vld [vmem:[#allocation9 + $0x158] sm:$0xff]  ;;  %v2884_v1 = vpack.c.bf16 %v841_v57, %v837_v56  ;;  %v2916_v2 = vpack.c.bf16 %v843_v60, %v839_v58  ;;  %v2886_v3 = vpack.c.bf16 %v850_v62, %v846_v61  ;;  %v845_v4 = vld [vmem:[#allocation9 + $0x140] sm:$0xff]  ;;  %v847_v6 = vld [vmem:[#allocation9 + $0x150] sm:$0xff] }
  0xf1   : > { %2911 = vmatprep.subr.bf16.mxu1 %v2910_v46  ;;  %v852_v0 = vld [vmem:[#allocation9 + $0x178] sm:$0xff]  ;;  %v849_v5 = vld [vmem:[#allocation9 + $0x160] sm:$0xff]  ;;  %v851_v8 = vld [vmem:[#allocation9 + $0x170] sm:$0xff] }
  0xf2   : > { %v2918_v7 = vpack.c.bf16 %v852_v0, %v848_v63  ;;  %v854_v10 = vld [vmem:[#allocation9 + $0x188] sm:$0xff]  ;;  %v856_v12 = vld [vmem:[#allocation9 + $0x198] sm:$0xff]  ;;  %v2888_v14 = vpack.c.bf16 %v849_v5, %v845_v4  ;;  %v2920_v15 = vpack.c.bf16 %v851_v8, %v847_v6  ;;  %v853_v17 = vld [vmem:[#allocation9 + $0x180] sm:$0xff] }
  0xf3   : > { %2881 = vmatpush1.bf16.msra.mxu0 %v2880_v53  ;;  %v858_v11 = vld [vmem:[#allocation9 + $0x1a8] sm:$0xff]  ;;  %v860_v13 = vld [vmem:[#allocation9 + $0x1b8] sm:$0xff]  ;;  %v857_v18 = vld [vmem:[#allocation9 + $0x1a0] sm:$0xff] }
  0xf4   : > { %2913 = vmatpush1.bf16.msra.mxu1 %v2912_v54  ;;  %2883 = vmatprep.subr.bf16.mxu0 %v2882_v55  ;;  %v2890_v16 = vpack.c.bf16 %v858_v11, %v854_v10  ;;  %v855_v19 = vld [vmem:[#allocation9 + $0x190] sm:$0xff]  ;;  %v2922_v20 = vpack.c.bf16 %v860_v13, %v856_v12  ;;  %v862_v22 = vld [vmem:[#allocation9 + $0x1c8] sm:$0xff]  ;;  %v864_v24 = vld [vmem:[#allocation9 + $0x1d8] sm:$0xff]  ;;  %v2892_v26 = vpack.c.bf16 %v857_v18, %v853_v17 }
  0xf5   : > { %2915 = vmatprep.subr.bf16.mxu1 %v2914_v59  ;;  %v859_v21 = vld [vmem:[#allocation9 + $0x1b0] sm:$0xff]  ;;  %v866_v23 = vld [vmem:[#allocation9 + $0x1e8] sm:$0xff]  ;;  %v868_v25 = vld [vmem:[#allocation9 + $0x1f8] sm:$0xff] }
  0xf6   : > { %v2924_v27 = vpack.c.bf16 %v859_v21, %v855_v19  ;;  %v2894_v28 = vpack.c.bf16 %v866_v23, %v862_v22  ;;  %v861_v29 = vld [vmem:[#allocation9 + $0x1c0] sm:$0xff]  ;;  %v863_v31 = vld [vmem:[#allocation9 + $0x1d0] sm:$0xff]  ;;  %v2926_v32 = vpack.c.bf16 %v868_v25, %v864_v24  ;;  %v1150_v34 = vld [vmem:[#allocation4 + $0x8] sm:$0xff] }
  0xf7   : > { %2885 = vmatpush1.bf16.msra.mxu0 %v2884_v1  ;;  %v865_v30 = vld [vmem:[#allocation9 + $0x1e0] sm:$0xff]  ;;  %v867_v33 = vld [vmem:[#allocation9 + $0x1f0] sm:$0xff]  ;;  %v1154_v35 = vld [vmem:[#allocation4 + $0x28] sm:$0xff] }
  0xf8   : > { %2917 = vmatpush1.bf16.msra.mxu1 %v2916_v2  ;;  %2887 = vmatprep.subr.bf16.mxu0 %v2886_v3  ;;  %v1152_v36 = vld [vmem:[#allocation4 + $0x18] sm:$0xff]  ;;  %v2896_v38 = vpack.c.bf16 %v865_v30, %v861_v29  ;;  %v2928_v39 = vpack.c.bf16 %v867_v33, %v863_v31  ;;  %v4340_v40 = vpack.c.bf16 %v1154_v35, %v1150_v34  ;;  %v1149_v41 = vld [vmem:[#allocation4] sm:$0xff]  ;;  %v1151_v44 = vld [vmem:[#allocation4 + $0x10] sm:$0xff] }
  0xf9   : > { %2919 = vmatprep.subr.bf16.mxu1 %v2918_v7  ;;  %v1156_v37 = vld [vmem:[#allocation4 + $0x38] sm:$0xff]  ;;  %v1153_v42 = vld [vmem:[#allocation4 + $0x20] sm:$0xff]  ;;  %v1155_v45 = vld [vmem:[#allocation4 + $0x30] sm:$0xff] }
  0xfa   : > { %v4342_v43 = vpack.c.bf16 %v1156_v37, %v1152_v36  ;;  %v1158_v46 = vld [vmem:[#allocation4 + $0x48] sm:$0xff]  ;;  %v797_v48 = vld [vmem:[%s4306_s27] sm:$0xff]  ;;  %v4345_v49 = vpack.c.bf16 %v1153_v42, %v1149_v41  ;;  %v1160_v50 = vld [vmem:[#allocation4 + $0x58] sm:$0xff]  ;;  %v4348_v52 = vpack.c.bf16 %v1155_v45, %v1151_v44 }
  0xfb   : > { %2889 = vmatpush1.bf16.msra.mxu0 %v2888_v14  ;;  %v1162_v47 = vld [vmem:[#allocation4 + $0x68] sm:$0xff]  ;;  %v1164_v51 = vld [vmem:[#allocation4 + $0x78] sm:$0xff]  ;;  %v1157_v53 = vld [vmem:[#allocation4 + $0x40] sm:$0xff] }
  0xfc   : > { %2921 = vmatpush1.bf16.msra.mxu1 %v2920_v15  ;;  %2891 = vmatprep.subr.bf16.mxu0 %v2890_v16  ;;  %v1161_v54 = vld [vmem:[#allocation4 + $0x60] sm:$0xff]  ;;  %v4351_v55 = vpack.c.bf16 %v1162_v47, %v1158_v46  ;;  %v1159_v56 = vld [vmem:[#allocation4 + $0x50] sm:$0xff]  ;;  %v4353_v58 = vpack.c.bf16 %v1164_v51, %v1160_v50  ;;  %v1166_v59 = vld [vmem:[#allocation4 + $0x88] sm:$0xff] }
  0xfd   : > { %2923 = vmatprep.subr.bf16.mxu1 %v2922_v20  ;;  %v1163_v57 = vld [vmem:[#allocation4 + $0x70] sm:$0xff]  ;;  %v1170_v60 = vld [vmem:[#allocation4 + $0xa8] sm:$0xff]  ;;  %v4357_v62 = vpack.c.bf16 %v1161_v54, %v1157_v53  ;;  %v1168_v63 = vld [vmem:[#allocation4 + $0x98] sm:$0xff] }
  0xfe   : > { %v798_v61 = vld [vmem:[%s4306_s27 + $0x8] sm:$0xff]  ;;  %v1172_v0 = vld [vmem:[#allocation4 + $0xb8] sm:$0xff]  ;;  %v4361_v1 = vpack.c.bf16 %v1163_v57, %v1159_v56  ;;  %v1165_v2 = vld [vmem:[#allocation4 + $0x80] sm:$0xff]  ;;  %v4365_v4 = vpack.c.bf16 %v1170_v60, %v1166_v59 }
  0xff   : > { %2893 = vmatpush1.bf16.msra.mxu0 %v2892_v26  ;;  %v1169_v3 = vld [vmem:[#allocation4 + $0xa0] sm:$0xff]  ;;  %v1167_v5 = vld [vmem:[#allocation4 + $0x90] sm:$0xff]  ;;  %v4368_v7 = vpack.c.bf16 %v1172_v0, %v1168_v63  ;;  %v1174_v8 = vld [vmem:[#allocation4 + $0xc8] sm:$0xff] }
 0x100   : > { %2925 = vmatpush1.bf16.msra.mxu1 %v2924_v27  ;;  %2895 = vmatprep.subr.bf16.mxu0 %v2894_v28  ;;  %v1171_v6 = vld [vmem:[#allocation4 + $0xb0] sm:$0xff]  ;;  %v1178_v10 = vld [vmem:[#allocation4 + $0xe8] sm:$0xff]  ;;  %v4372_v12 = vpack.c.bf16 %v1169_v3, %v1165_v2  ;;  %v1176_v13 = vld [vmem:[#allocation4 + $0xd8] sm:$0xff] }
 0x101   : > { %2927 = vmatprep.subr.bf16.mxu1 %v2926_v32  ;;  %v799_v11 = vld [vmem:[%s4306_s27 + $0x10] sm:$0xff]  ;;  %v1180_v14 = vld [vmem:[#allocation4 + $0xf8] sm:$0xff]  ;;  %v4376_v15 = vpack.c.bf16 %v1171_v6, %v1167_v5  ;;  %v1173_v16 = vld [vmem:[#allocation4 + $0xc0] sm:$0xff]  ;;  %v4380_v18 = vpack.c.bf16 %v1178_v10, %v1174_v8 }
 0x102   : > { %v1177_v17 = vld [vmem:[#allocation4 + $0xe0] sm:$0xff]  ;;  %v1175_v19 = vld [vmem:[#allocation4 + $0xd0] sm:$0xff]  ;;  %v4383_v21 = vpack.c.bf16 %v1180_v14, %v1176_v13  ;;  %v1182_v22 = vld [vmem:[#allocation4 + $0x108] sm:$0xff] }
 0x103   : > { %2897 = vmatpush1.bf16.msra.mxu0 %v2896_v38  ;;  %v1179_v20 = vld [vmem:[#allocation4 + $0xf0] sm:$0xff]  ;;  %v1186_v23 = vld [vmem:[#allocation4 + $0x128] sm:$0xff]  ;;  %v800_v24 = vld [vmem:[%s4306_s27 + $0x18] sm:$0xff]  ;;  %v4387_v25 = vpack.c.bf16 %v1177_v17, %v1173_v16 }
 0x104   : > { %2929 = vmatpush1.bf16.msra.mxu1 %v2928_v39  ;;  %2931 = vmatprep.subr.bf16.mxu0 %v4340_v40  ;;  %v1184_v26 = vld [vmem:[#allocation4 + $0x118] sm:$0xff]  ;;  %v4391_v28 = vpack.c.bf16 %v1179_v20, %v1175_v19  ;;  %v1181_v29 = vld [vmem:[#allocation4 + $0x100] sm:$0xff]  ;;  %v4395_v31 = vpack.c.bf16 %v1186_v23, %v1182_v22  ;;  %v1183_v32 = vld [vmem:[#allocation4 + $0x110] sm:$0xff] }
 0x105   : > { %2963 = vmatprep.subr.bf16.mxu1 %v4342_v43  ;;  %v1188_v27 = vld [vmem:[#allocation4 + $0x138] sm:$0xff]  ;;  %v1185_v30 = vld [vmem:[#allocation4 + $0x120] sm:$0xff]  ;;  %v1187_v33 = vld [vmem:[#allocation4 + $0x130] sm:$0xff] }
 0x106   : > { %956 = vmatmul.mubr.f32.vlgmr.msra.gmra.mrb[0].mxu0 %v797_v48  ;;  %v4398_v34 = vpack.c.bf16 %v1188_v27, %v1184_v26  ;;  %v1190_v35 = vld [vmem:[#allocation4 + $0x148] sm:$0xff]  ;;  %v801_v37 = vld [vmem:[%s4306_s27 + $0x20] sm:$0xff]  ;;  %v4402_v38 = vpack.c.bf16 %v1185_v30, %v1181_v29  ;;  %v1192_v39 = vld [vmem:[#allocation4 + $0x158] sm:$0xff]  ;;  %v4406_v42 = vpack.c.bf16 %v1187_v33, %v1183_v32  ;;  %v871_v32 = vlaneseq }
 0x107   : > { %1069 = vmatmul.mubr.f32.vlgmr.msra.gmra.mrb[0].mxu1 %v797_v48  ;;  %2933 = vmatpush1.bf16.msra.mxu0 %v4345_v49  ;;  %v1194_v36 = vld [vmem:[#allocation4 + $0x168] sm:$0xff]  ;;  %v1196_v41 = vld [vmem:[#allocation4 + $0x178] sm:$0xff]  ;;  %v1189_v44 = vld [vmem:[#allocation4 + $0x140] sm:$0xff] }
 0x108   : > { %2965 = vmatpush1.bf16.msra.mxu1 %v4348_v52  ;;  %961 = vmatprep.mubr.f32.mxu0 %v4025_v9  ;;  %v1193_v45 = vld [vmem:[#allocation4 + $0x160] sm:$0xff]  ;;  %v4410_v46 = vpack.c.bf16 %v1194_v36, %v1190_v35  ;;  %v1191_v47 = vld [vmem:[#allocation4 + $0x150] sm:$0xff]  ;;  %v4413_v50 = vpack.c.bf16 %v1196_v41, %v1192_v39  ;;  %v1198_v51 = vld [vmem:[#allocation4 + $0x188] sm:$0xff]  ;;  %v872_v33 = vshrl.u32 %v871_v32, 7 }
 0x109   : > { %1074 = vmatprep.mubr.f32.mxu1 %v4025_v9  ;;  %2935 = vmatprep.subr.bf16.mxu0 %v4351_v55  ;;  %v1195_v48 = vld [vmem:[#allocation4 + $0x170] sm:$0xff]  ;;  %v1202_v53 = vld [vmem:[#allocation4 + $0x1a8] sm:$0xff]  ;;  %v4417_v56 = vpack.c.bf16 %v1193_v45, %v1189_v44  ;;  %v1200_v57 = vld [vmem:[#allocation4 + $0x198] sm:$0xff] }
 0x10a   : > { %962 = vmatmul.mubr.f32.gmra.mrb[2].mxu0 %v798_v61  ;;  %2967 = vmatprep.subr.bf16.mxu1 %v4353_v58  ;;  %v802_v54 = vld [vmem:[%s4306_s27 + $0x28] sm:$0xff]  ;;  %v1204_v59 = vld [vmem:[#allocation4 + $0x1b8] sm:$0xff]  ;;  %v4421_v60 = vpack.c.bf16 %v1195_v48, %v1191_v47  ;;  %v1201_v63 = vld [vmem:[#allocation4 + $0x1a0] sm:$0xff]  ;;  %v4425_v0 = vpack.c.bf16 %v1202_v53, %v1198_v51  ;;  %v873_v35 = vsub.s32 0, %v872_v33  ;;  %v885_v45 = vsub.s32 3, %v872_v33 }
 0x10b   : > { %1075 = vmatmul.mubr.f32.gmra.mrb[2].mxu1 %v798_v61  ;;  %2937 = vmatpush1.bf16.msra.mxu0 %v4357_v62  ;;  %v1197_v61 = vld [vmem:[#allocation4 + $0x180] sm:$0xff]  ;;  %v1199_v2 = vld [vmem:[#allocation4 + $0x190] sm:$0xff]  ;;  %v4428_v5 = vpack.c.bf16 %v1204_v59, %v1200_v57  ;;  %v1206_v6 = vld [vmem:[#allocation4 + $0x1c8] sm:$0xff] }
 0x10c   : > { %2969 = vmatpush1.bf16.msra.mxu1 %v4361_v1  ;;  %967 = vmatprep.mubr.f32.mxu0 %v4025_v9  ;;  %v1203_v3 = vld [vmem:[#allocation4 + $0x1b0] sm:$0xff]  ;;  %v1210_v8 = vld [vmem:[#allocation4 + $0x1e8] sm:$0xff]  ;;  %v1208_v13 = vld [vmem:[#allocation4 + $0x1d8] sm:$0xff] }
 0x10d   : > { %1080 = vmatprep.mubr.f32.mxu1 %v4025_v9  ;;  %2939 = vmatprep.subr.bf16.mxu0 %v4365_v4  ;;  %v803_v10 = vld [vmem:[%s4306_s27 + $0x30] sm:$0xff]  ;;  %v1212_v14 = vld [vmem:[#allocation4 + $0x1f8] sm:$0xff]  ;;  %v4436_v16 = vpack.c.bf16 %v1203_v3, %v1199_v2  ;;  %v1205_v17 = vld [vmem:[#allocation4 + $0x1c0] sm:$0xff]  ;;  %v4440_v20 = vpack.c.bf16 %v1210_v8, %v1206_v6 }
 0x10e   : > { %968 = vmatmul.mubr.f32.gmra.mrb[4].mxu0 %v799_v11  ;;  %2971 = vmatprep.subr.bf16.mxu1 %v4368_v7  ;;  %v1209_v19 = vld [vmem:[#allocation4 + $0x1e0] sm:$0xff]  ;;  %v1207_v22 = vld [vmem:[#allocation4 + $0x1d0] sm:$0xff]  ;;  %v804_v26 = vld [vmem:[%s4306_s27 + $0x38] sm:$0xff] }
 0x10f   : > { %1081 = vmatmul.mubr.f32.gmra.mrb[4].mxu1 %v799_v11  ;;  %2941 = vmatpush1.bf16.msra.mxu0 %v4372_v12  ;;  %v4432_v11 = vpack.c.bf16 %v1201_v63, %v1197_v61  ;;  %v1211_v23 = vld [vmem:[#allocation4 + $0x1f0] sm:$0xff]  ;;  %v4447_v27 = vpack.c.bf16 %v1209_v19, %v1205_v17  ;;  %v869_v36 = vld [vmem:[#allocation14] sm:$0xf]  ;;  %v881_v63 = vsub.s32 2, %v872_v33 }
 0x110   : > { %2973 = vmatpush1.bf16.msra.mxu1 %v4376_v15  ;;  %973 = vmatprep.mubr.f32.mxu0 %v4025_v9  ;;  %v4451_v29 = vpack.c.bf16 %v1211_v23, %v1207_v22  ;;  %v1213_v30 = vld [vmem:[#allocation2] sm:$0xff]  ;;  %v4496_v39 = vrot.slane %v869_v36, %v873_v35  ;;  %v4502_v61 = vrot.slane %v869_v36, %v885_v45  ;;  %v1214_v23 = vld [vmem:[#allocation3] sm:$0xff] }
 0x111   : > { %1086 = vmatprep.mubr.f32.mxu1 %v4025_v9  ;;  %2943 = vmatprep.subr.bf16.mxu0 %v4380_v18  ;;  %v4505_v3 = vrot.slane %v869_v36, %v881_v63 }
 0x112   : > { %974 = vmatmul.mubr.f32.gmra.mrb[6].mxu0 %v800_v24  ;;  %2975 = vmatprep.subr.bf16.mxu1 %v4383_v21 }
 0x113   : > { %1087 = vmatmul.mubr.f32.gmra.mrb[6].mxu1 %v800_v24  ;;  %2945 = vmatpush1.bf16.msra.mxu0 %v4387_v25  ;;  %v4443_v24 = vpack.c.bf16 %v1212_v14, %v1208_v13 }
 0x114   : > { %2977 = vmatpush1.bf16.msra.mxu1 %v4391_v28  ;;  %979 = vmatprep.mubr.f32.mxu0 %v4025_v9 }
 0x115   : > { %1092 = vmatprep.mubr.f32.mxu1 %v4025_v9  ;;  %2947 = vmatprep.subr.bf16.mxu0 %v4395_v31 }
 0x116   : > { %980 = vmatmul.mubr.f32.gmra.mrb[8].mxu0 %v801_v37  ;;  %2979 = vmatprep.subr.bf16.mxu1 %v4398_v34 }
 0x117   : > { %1093 = vmatmul.mubr.f32.gmra.mrb[8].mxu1 %v801_v37  ;;  %2949 = vmatpush1.bf16.msra.mxu0 %v4402_v38  ;;  %v877_v37 = vsub.s32 1, %v872_v33 }
 0x118   : > { %2981 = vmatpush1.bf16.msra.mxu1 %v4406_v42  ;;  %985 = vmatprep.mubr.f32.mxu0 %v4025_v9 }
 0x119   : > { %1098 = vmatprep.mubr.f32.mxu1 %v4025_v9  ;;  %2951 = vmatprep.subr.bf16.mxu0 %v4410_v46  ;;  %v4498_v41 = vrot.slane %v869_v36, %v877_v37 }
 0x11a   : > { %986 = vmatmul.mubr.f32.gmra.mrb[10].mxu0 %v802_v54  ;;  %2983 = vmatprep.subr.bf16.mxu1 %v4413_v50 }
 0x11b   : > { %1099 = vmatmul.mubr.f32.gmra.mrb[10].mxu1 %v802_v54  ;;  %2953 = vmatpush1.bf16.msra.mxu0 %v4417_v56 }
 0x11c   : > { %2985 = vmatpush1.bf16.msra.mxu1 %v4421_v60  ;;  %991 = vmatprep.mubr.f32.mxu0 %v4025_v9 }
 0x11d   : > { %1104 = vmatprep.mubr.f32.mxu1 %v4025_v9  ;;  %2955 = vmatprep.subr.bf16.mxu0 %v4425_v0 }
 0x11e   : > { %992 = vmatmul.mubr.f32.gmra.mrb[12].mxu0 %v803_v10  ;;  %2987 = vmatprep.subr.bf16.mxu1 %v4428_v5 }
 0x11f   : > { %1105 = vmatmul.mubr.f32.gmra.mrb[12].mxu1 %v803_v10  ;;  %2957 = vmatpush1.bf16.msra.mxu0 %v4432_v11 }
 0x120   : > { %2989 = vmatpush1.bf16.msra.mxu1 %v4436_v16  ;;  %997 = vmatprep.mubr.f32.mxu0 %v4025_v9 }
 0x121   : > { %1110 = vmatprep.mubr.f32.mxu1 %v4025_v9  ;;  %2959 = vmatprep.subr.bf16.mxu0 %v4440_v20 }
 0x122   : > { %998 = vmatmul.mubr.f32.gmra.mrb[14].mxu0 %v804_v26  ;;  %2991 = vmatprep.subr.bf16.mxu1 %v4443_v24 }
 0x123   : > { %1111 = vmatmul.mubr.f32.gmra.mrb[14].mxu1 %v804_v26  ;;  %2961 = vmatpush1.bf16.msra.mxu0 %v4447_v27 }
 0x124   : > { %2993 = vmatpush1.bf16.msra.mxu1 %v4451_v29  ;;  %1283 = vmatprep.mubr.f32.mxu0 %v4025_v9 }
 0x125   : > { %1354 = vmatprep.mubr.f32.mxu1 %v4025_v9  ;;  %2995 = vmatprep.subr.bf16.mxu0 %v4340_v40 }
 0x126   : > { %1284 = vmatmul.mubr.f32.vlgmr.msra.gmra.mrb[0].mxu0 %v1213_v30  ;;  %3027 = vmatprep.subr.bf16.mxu1 %v4342_v43 }
 0x127   : > { %1355 = vmatmul.mubr.f32.vlgmr.msra.gmra.mrb[0].mxu1 %v1213_v30  ;;  %2997 = vmatpush1.bf16.msra.mxu0 %v4345_v49 }
 0x128   : > { %3029 = vmatpush1.bf16.msra.mxu1 %v4348_v52  ;;  %2999 = vmatprep.subr.bf16.mxu0 %v4351_v55 }
 0x129   : > { %3031 = vmatprep.subr.bf16.mxu1 %v4353_v58  ;;  %1459 = vmatprep.mubr.f32.mxu0 %v4025_v9 }
 0x12a   : > { %1530 = vmatprep.mubr.f32.mxu1 %v4025_v9 }
 0x12b   : > { %3001 = vmatpush1.bf16.msra.mxu0 %v4357_v62 }
 0x12c   : > { %3033 = vmatpush1.bf16.msra.mxu1 %v4361_v1  ;;  %3003 = vmatprep.subr.bf16.mxu0 %v4365_v4 }
 0x12d   : > { %3035 = vmatprep.subr.bf16.mxu1 %v4368_v7 }
 0x12f   : > { %3005 = vmatpush1.bf16.msra.mxu0 %v4372_v12 }
 0x130   : > { %3037 = vmatpush1.bf16.msra.mxu1 %v4376_v15  ;;  %3007 = vmatprep.subr.bf16.mxu0 %v4380_v18 }
 0x131   : > { %3039 = vmatprep.subr.bf16.mxu1 %v4383_v21 }
 0x133   : > { %3009 = vmatpush1.bf16.msra.mxu0 %v4387_v25 }
 0x134   : > { %3041 = vmatpush1.bf16.msra.mxu1 %v4391_v28  ;;  %3011 = vmatprep.subr.bf16.mxu0 %v4395_v31 }
 0x135   : > { %3043 = vmatprep.subr.bf16.mxu1 %v4398_v34 }
 0x137   : > { %3013 = vmatpush1.bf16.msra.mxu0 %v4402_v38 }
 0x138   : > { %3045 = vmatpush1.bf16.msra.mxu1 %v4406_v42  ;;  %3015 = vmatprep.subr.bf16.mxu0 %v4410_v46 }
 0x139   : > { %3047 = vmatprep.subr.bf16.mxu1 %v4413_v50 }
 0x13b   : > { %3017 = vmatpush1.bf16.msra.mxu0 %v4417_v56 }
 0x13c   : > { %3049 = vmatpush1.bf16.msra.mxu1 %v4421_v60  ;;  %3019 = vmatprep.subr.bf16.mxu0 %v4425_v0 }
 0x13d   : > { %3051 = vmatprep.subr.bf16.mxu1 %v4428_v5 }
 0x13f   : > { %3021 = vmatpush1.bf16.msra.mxu0 %v4432_v11 }
 0x140   : > { %3053 = vmatpush1.bf16.msra.mxu1 %v4436_v16  ;;  %3023 = vmatprep.subr.bf16.mxu0 %v4440_v20 }
 0x141   : > { %3055 = vmatprep.subr.bf16.mxu1 %v4443_v24 }
 0x143   : > { %3025 = vmatpush1.bf16.msra.mxu0 %v4447_v27 }
 0x144   : > { %3057 = vmatpush1.bf16.msra.mxu1 %v4451_v29  ;;  %3059 = vmatprep.subr.bf16.mxu0 %v4340_v40 }
 0x145   : > { %3091 = vmatprep.subr.bf16.mxu1 %v4342_v43 }
 0x1f9   : > { %v1285_v44 = vpop.f32.mrb[0].mxu0 }
 0x1fa   : > { %v3442_v47 = vadd.f32 %v1285_v44, %v4496_v39  ;;  %v1356_v48 = vpop.f32.mrb[0].mxu1  ;;  %v1287_v51 = vpop.f32.mrb[1].mxu0 }
 0x1fb   : > { %v3443_v53 = vadd.f32 %v1287_v51, %v4498_v41  ;;  %v1358_v54 = vpop.f32.mrb[1].mxu1  ;;  %v3458_v8 = vadd.f32 %v1356_v48, %v4505_v3 }
 0x1fc   : > { %v2823_v57 = vmul.f32 -1.442695, %v3442_v47  ;;  %v3459_v2 = vadd.f32 %v1358_v54, %v4502_v61 }
 0x1fd   : > { %v2824_v59 = vmul.f32 -1.442695, %v3443_v53 }
 0x1fe   : > { %3614 = vpow2.f32 %v2823_v57  ;;  %v2825_v6 = vmul.f32 -1.442695, %v3459_v2 }
 0x1ff   : > { %3616 = vpow2.f32 %v2824_v59 }
 0x200   : > { %3618 = vpow2.f32 %v2825_v6 }
 0x201   : > { %3620 = vtanh.f32 %v3458_v8 }
 0x208   : > { %v3615_v10 = vpop.eup %3614 }
 0x209   : > { %v3617_v13 = vpop.eup %3616  ;;  %v1368_v14 = vadd.f32 1.0, %v3615_v10 }
 0x20a   : > { %v1374_v17 = vadd.f32 1.0, %v3617_v13  ;;  %v3619_v19 = vpop.eup %3618 }
 0x20b   : > { %3622 = vrcp.f32 %v1368_v14  ;;  %v3621_v22 = vpop.eup %3620  ;;  %v1381_v33 = vadd.f32 1.0, %v3619_v19 }
 0x20c   : > { %3624 = vrcp.f32 %v1374_v17 }
 0x20d   : > { %3626 = vrcp.f32 %v1381_v33 }
 0x215   : > { %v3623_v26 = vpop.eup %3622 }
 0x216   : > { %v3625_v30 = vpop.eup %3624  ;;  %v1385_v32 = vmul.f32 %v3623_v26, %v3621_v22 }
 0x217   : > { %v1384_v35 = vmul.f32 %v3625_v30, %v1214_v23  ;;  %v3627_v37 = vpop.eup %3626 }
 0x219   : > { %v4508_v36 = vadd.f32 %v1385_v32, %v1384_v35 }
 0x21b   : > { %3628 = vtanh.f32 %v4508_v36 }
 0x225   : > { %v3629_v44 = vpop.eup %3628 }
 0x226   : > { %v1388_v45 = vmul.f32 %v3629_v44, %v3627_v37 }
 0x228   : > { %1389 = vst [vmem:[%s4320_s17] sm:$0xff] %v1388_v45  ;;  %1460 = vmatmul.mubr.f32.vlgmr.msra.gmra.mrb[2].mxu0 %v1388_v45  ;;  %1531 = vmatmul.mubr.f32.vlgmr.msra.gmra.mrb[2].mxu1 %v1388_v45 }
 0x229   : > { %3061 = vmatpush1.bf16.msra.mxu0 %v4345_v49  ;;  %3093 = vmatpush1.bf16.msra.mxu1 %v4348_v52 }
 0x22a   : > { %3063 = vmatprep.subr.bf16.mxu0 %v4351_v55  ;;  %3095 = vmatprep.subr.bf16.mxu1 %v4353_v58 }
 0x22b   : > { %1636 = vmatprep.mubr.f32.mxu0 %v4025_v9  ;;  %1707 = vmatprep.mubr.f32.mxu1 %v4025_v9 }
 0x22d   : > { %3065 = vmatpush1.bf16.msra.mxu0 %v4357_v62  ;;  %3097 = vmatpush1.bf16.msra.mxu1 %v4361_v1 }
 0x22e   : > { %3067 = vmatprep.subr.bf16.mxu0 %v4365_v4  ;;  %3099 = vmatprep.subr.bf16.mxu1 %v4368_v7 }
 0x231   : > { %3069 = vmatpush1.bf16.msra.mxu0 %v4372_v12  ;;  %3101 = vmatpush1.bf16.msra.mxu1 %v4376_v15 }
 0x232   : > { %3071 = vmatprep.subr.bf16.mxu0 %v4380_v18  ;;  %3103 = vmatprep.subr.bf16.mxu1 %v4383_v21 }
 0x235   : > { %3073 = vmatpush1.bf16.msra.mxu0 %v4387_v25  ;;  %3105 = vmatpush1.bf16.msra.mxu1 %v4391_v28 }
 0x236   : > { %3075 = vmatprep.subr.bf16.mxu0 %v4395_v31  ;;  %3107 = vmatprep.subr.bf16.mxu1 %v4398_v34 }
 0x239   : > { %3077 = vmatpush1.bf16.msra.mxu0 %v4402_v38  ;;  %3109 = vmatpush1.bf16.msra.mxu1 %v4406_v42 }
 0x23a   : > { %3079 = vmatprep.subr.bf16.mxu0 %v4410_v46  ;;  %3111 = vmatprep.subr.bf16.mxu1 %v4413_v50 }
 0x23d   : > { %3081 = vmatpush1.bf16.msra.mxu0 %v4417_v56  ;;  %3113 = vmatpush1.bf16.msra.mxu1 %v4421_v60 }
 0x23e   : > { %3083 = vmatprep.subr.bf16.mxu0 %v4425_v0  ;;  %3115 = vmatprep.subr.bf16.mxu1 %v4428_v5 }
 0x241   : > { %3085 = vmatpush1.bf16.msra.mxu0 %v4432_v11  ;;  %3117 = vmatpush1.bf16.msra.mxu1 %v4436_v16 }
 0x242   : > { %3087 = vmatprep.subr.bf16.mxu0 %v4440_v20  ;;  %3119 = vmatprep.subr.bf16.mxu1 %v4443_v24 }
 0x245   : > { %3089 = vmatpush1.bf16.msra.mxu0 %v4447_v27  ;;  %3121 = vmatpush1.bf16.msra.mxu1 %v4451_v29 }
 0x246   : > { %3123 = vmatprep.subr.bf16.mxu0 %v4340_v40  ;;  %3155 = vmatprep.subr.bf16.mxu1 %v4342_v43 }
 0x2fb   : > { %v1461_v47 = vpop.f32.mrb[2].mxu0  ;;  %v1532_v48 = vpop.f32.mrb[2].mxu1 }
 0x2fc   : > { %v3444_v51 = vadd.f32 %v1461_v47, %v4496_v39  ;;  %v1463_v53 = vpop.f32.mrb[3].mxu0  ;;  %v1534_v54 = vpop.f32.mrb[3].mxu1  ;;  %v3460_v8 = vadd.f32 %v1532_v48, %v4505_v3 }
 0x2fd   : > { %v3445_v57 = vadd.f32 %v1463_v53, %v4498_v41  ;;  %v3461_v2 = vadd.f32 %v1534_v54, %v4502_v61 }
 0x2fe   : > { %v2826_v59 = vmul.f32 -1.442695, %v3444_v51 }
 0x2ff   : > { %v2827_v63 = vmul.f32 -1.442695, %v3445_v57  ;;  %v2828_v6 = vmul.f32 -1.442695, %v3461_v2 }
 0x300   : > { %3630 = vpow2.f32 %v2826_v59 }
 0x301   : > { %3632 = vpow2.f32 %v2827_v63 }
 0x302   : > { %3634 = vpow2.f32 %v2828_v6 }
 0x303   : > { %3636 = vtanh.f32 %v3460_v8 }
 0x30a   : > { %v3631_v10 = vpop.eup %3630 }
 0x30b   : > { %v3633_v13 = vpop.eup %3632  ;;  %v1544_v14 = vadd.f32 1.0, %v3631_v10 }
 0x30c   : > { %v1550_v17 = vadd.f32 1.0, %v3633_v13  ;;  %v3635_v19 = vpop.eup %3634 }
 0x30d   : > { %3638 = vrcp.f32 %v1544_v14  ;;  %v3637_v22 = vpop.eup %3636  ;;  %v1557_v32 = vadd.f32 1.0, %v3635_v19 }
 0x30e   : > { %3640 = vrcp.f32 %v1550_v17 }
 0x30f   : > { %3642 = vrcp.f32 %v1557_v32 }
 0x317   : > { %v3639_v23 = vpop.eup %3638 }
 0x318   : > { %v3641_v26 = vpop.eup %3640  ;;  %v1561_v30 = vmul.f32 %v3639_v23, %v3637_v22 }
 0x319   : > { %v1560_v33 = vmul.f32 %v3641_v26, %v4508_v36  ;;  %v3643_v37 = vpop.eup %3642 }
 0x31b   : > { %v4551_v35 = vadd.f32 %v1561_v30, %v1560_v33 }
 0x31d   : > { %3644 = vtanh.f32 %v4551_v35 }
 0x327   : > { %v3645_v44 = vpop.eup %3644 }
 0x328   : > { %v1564_v45 = vmul.f32 %v3645_v44, %v3643_v37 }
 0x32a   : > { %2829 = vst [vmem:[%s4320_s17 + $0x8] sm:$0xff] %v1564_v45  ;;  %1637 = vmatmul.mubr.f32.vlgmr.msra.gmra.mrb[4].mxu0 %v1564_v45  ;;  %1708 = vmatmul.mubr.f32.vlgmr.msra.gmra.mrb[4].mxu1 %v1564_v45 }
 0x32b   : > { %3125 = vmatpush1.bf16.msra.mxu0 %v4345_v49  ;;  %3157 = vmatpush1.bf16.msra.mxu1 %v4348_v52 }
 0x32c   : > { %3127 = vmatprep.subr.bf16.mxu0 %v4351_v55  ;;  %3159 = vmatprep.subr.bf16.mxu1 %v4353_v58 }
 0x32d   : > { %1813 = vmatprep.mubr.f32.mxu0 %v4025_v9  ;;  %1884 = vmatprep.mubr.f32.mxu1 %v4025_v9 }
 0x32f   : > { %3129 = vmatpush1.bf16.msra.mxu0 %v4357_v62  ;;  %3161 = vmatpush1.bf16.msra.mxu1 %v4361_v1 }
 0x330   : > { %3131 = vmatprep.subr.bf16.mxu0 %v4365_v4  ;;  %3163 = vmatprep.subr.bf16.mxu1 %v4368_v7 }
 0x333   : > { %3133 = vmatpush1.bf16.msra.mxu0 %v4372_v12  ;;  %3165 = vmatpush1.bf16.msra.mxu1 %v4376_v15 }
 0x334   : > { %3135 = vmatprep.subr.bf16.mxu0 %v4380_v18  ;;  %3167 = vmatprep.subr.bf16.mxu1 %v4383_v21 }
 0x337   : > { %3137 = vmatpush1.bf16.msra.mxu0 %v4387_v25  ;;  %3169 = vmatpush1.bf16.msra.mxu1 %v4391_v28 }
 0x338   : > { %3139 = vmatprep.subr.bf16.mxu0 %v4395_v31  ;;  %3171 = vmatprep.subr.bf16.mxu1 %v4398_v34 }
 0x33b   : > { %3141 = vmatpush1.bf16.msra.mxu0 %v4402_v38  ;;  %3173 = vmatpush1.bf16.msra.mxu1 %v4406_v42 }
 0x33c   : > { %3143 = vmatprep.subr.bf16.mxu0 %v4410_v46  ;;  %3175 = vmatprep.subr.bf16.mxu1 %v4413_v50 }
 0x33f   : > { %3145 = vmatpush1.bf16.msra.mxu0 %v4417_v56  ;;  %3177 = vmatpush1.bf16.msra.mxu1 %v4421_v60 }
 0x340   : > { %3147 = vmatprep.subr.bf16.mxu0 %v4425_v0  ;;  %3179 = vmatprep.subr.bf16.mxu1 %v4428_v5 }
 0x343   : > { %3149 = vmatpush1.bf16.msra.mxu0 %v4432_v11  ;;  %3181 = vmatpush1.bf16.msra.mxu1 %v4436_v16 }
 0x344   : > { %3151 = vmatprep.subr.bf16.mxu0 %v4440_v20  ;;  %3183 = vmatprep.subr.bf16.mxu1 %v4443_v24 }
 0x347   : > { %3153 = vmatpush1.bf16.msra.mxu0 %v4447_v27  ;;  %3185 = vmatpush1.bf16.msra.mxu1 %v4451_v29 }
 0x348   : > { %3187 = vmatprep.subr.bf16.mxu0 %v4340_v40  ;;  %3219 = vmatprep.subr.bf16.mxu1 %v4342_v43 }
 0x3fd   : > { %v1638_v36 = vpop.f32.mrb[4].mxu0  ;;  %v1709_v47 = vpop.f32.mrb[4].mxu1 }
 0x3fe   : > { %v3446_v48 = vadd.f32 %v1638_v36, %v4496_v39  ;;  %v1640_v51 = vpop.f32.mrb[5].mxu0  ;;  %v1711_v53 = vpop.f32.mrb[5].mxu1  ;;  %v3462_v6 = vadd.f32 %v1709_v47, %v4505_v3 }
 0x3ff   : > { %v3447_v54 = vadd.f32 %v1640_v51, %v4498_v41  ;;  %v3463_v63 = vadd.f32 %v1711_v53, %v4502_v61 }
 0x400   : > { %v2830_v57 = vmul.f32 -1.442695, %v3446_v48 }
 0x401   : > { %v2831_v59 = vmul.f32 -1.442695, %v3447_v54  ;;  %v2832_v2 = vmul.f32 -1.442695, %v3463_v63 }
 0x402   : > { %3646 = vpow2.f32 %v2830_v57 }
 0x403   : > { %3648 = vpow2.f32 %v2831_v59 }
 0x404   : > { %3650 = vpow2.f32 %v2832_v2 }
 0x405   : > { %3652 = vtanh.f32 %v3462_v6 }
 0x40c   : > { %v3647_v8 = vpop.eup %3646 }
 0x40d   : > { %v3649_v10 = vpop.eup %3648  ;;  %v1721_v13 = vadd.f32 1.0, %v3647_v8 }
 0x40e   : > { %v1727_v14 = vadd.f32 1.0, %v3649_v10  ;;  %v3651_v17 = vpop.eup %3650 }
 0x40f   : > { %3654 = vrcp.f32 %v1721_v13  ;;  %v3653_v19 = vpop.eup %3652  ;;  %v1734_v30 = vadd.f32 1.0, %v3651_v17 }
 0x410   : > { %3656 = vrcp.f32 %v1727_v14 }
 0x411   : > { %3658 = vrcp.f32 %v1734_v30 }
 0x419   : > { %v3655_v22 = vpop.eup %3654 }
 0x41a   : > { %v3657_v23 = vpop.eup %3656  ;;  %v1738_v26 = vmul.f32 %v3655_v22, %v3653_v19 }
 0x41b   : > { %v1737_v32 = vmul.f32 %v3657_v23, %v4551_v35  ;;  %v3659_v37 = vpop.eup %3658 }
 0x41d   : > { %v4594_v33 = vadd.f32 %v1738_v26, %v1737_v32 }
 0x41f   : > { %3660 = vtanh.f32 %v4594_v33 }
 0x429   : > { %v3661_v44 = vpop.eup %3660 }
 0x42a   : > { %v1741_v45 = vmul.f32 %v3661_v44, %v3659_v37 }
 0x42c   : > { %2833 = vst [vmem:[%s4320_s17 + $0x10] sm:$0xff] %v1741_v45  ;;  %1814 = vmatmul.mubr.f32.vlgmr.msra.gmra.mrb[6].mxu0 %v1741_v45  ;;  %1885 = vmatmul.mubr.f32.vlgmr.msra.gmra.mrb[6].mxu1 %v1741_v45 }
 0x42d   : > { %3189 = vmatpush1.bf16.msra.mxu0 %v4345_v49  ;;  %3221 = vmatpush1.bf16.msra.mxu1 %v4348_v52 }
 0x42e   : > { %3191 = vmatprep.subr.bf16.mxu0 %v4351_v55  ;;  %3223 = vmatprep.subr.bf16.mxu1 %v4353_v58 }
 0x42f   : > { %1990 = vmatprep.mubr.f32.mxu0 %v4025_v9  ;;  %2061 = vmatprep.mubr.f32.mxu1 %v4025_v9 }
 0x431   : > { %3193 = vmatpush1.bf16.msra.mxu0 %v4357_v62  ;;  %3225 = vmatpush1.bf16.msra.mxu1 %v4361_v1 }
 0x432   : > { %3195 = vmatprep.subr.bf16.mxu0 %v4365_v4  ;;  %3227 = vmatprep.subr.bf16.mxu1 %v4368_v7 }
 0x435   : > { %3197 = vmatpush1.bf16.msra.mxu0 %v4372_v12  ;;  %3229 = vmatpush1.bf16.msra.mxu1 %v4376_v15 }
 0x436   : > { %3199 = vmatprep.subr.bf16.mxu0 %v4380_v18  ;;  %3231 = vmatprep.subr.bf16.mxu1 %v4383_v21 }
 0x439   : > { %3201 = vmatpush1.bf16.msra.mxu0 %v4387_v25  ;;  %3233 = vmatpush1.bf16.msra.mxu1 %v4391_v28 }
 0x43a   : > { %3203 = vmatprep.subr.bf16.mxu0 %v4395_v31  ;;  %3235 = vmatprep.subr.bf16.mxu1 %v4398_v34 }
 0x43d   : > { %3205 = vmatpush1.bf16.msra.mxu0 %v4402_v38  ;;  %3237 = vmatpush1.bf16.msra.mxu1 %v4406_v42 }
 0x43e   : > { %3207 = vmatprep.subr.bf16.mxu0 %v4410_v46  ;;  %3239 = vmatprep.subr.bf16.mxu1 %v4413_v50 }
 0x441   : > { %3209 = vmatpush1.bf16.msra.mxu0 %v4417_v56  ;;  %3241 = vmatpush1.bf16.msra.mxu1 %v4421_v60 }
 0x442   : > { %3211 = vmatprep.subr.bf16.mxu0 %v4425_v0  ;;  %3243 = vmatprep.subr.bf16.mxu1 %v4428_v5 }
 0x445   : > { %3213 = vmatpush1.bf16.msra.mxu0 %v4432_v11  ;;  %3245 = vmatpush1.bf16.msra.mxu1 %v4436_v16 }
 0x446   : > { %3215 = vmatprep.subr.bf16.mxu0 %v4440_v20  ;;  %3247 = vmatprep.subr.bf16.mxu1 %v4443_v24 }
 0x449   : > { %3217 = vmatpush1.bf16.msra.mxu0 %v4447_v27  ;;  %3249 = vmatpush1.bf16.msra.mxu1 %v4451_v29 }
 0x44a   : > { %3251 = vmatprep.subr.bf16.mxu0 %v4340_v40  ;;  %3283 = vmatprep.subr.bf16.mxu1 %v4342_v43 }
 0x4ff   : > { %v1815_v35 = vpop.f32.mrb[6].mxu0  ;;  %v1886_v36 = vpop.f32.mrb[6].mxu1 }
 0x500   : > { %v3448_v47 = vadd.f32 %v1815_v35, %v4496_v39  ;;  %v1817_v48 = vpop.f32.mrb[7].mxu0  ;;  %v1888_v51 = vpop.f32.mrb[7].mxu1  ;;  %v3464_v2 = vadd.f32 %v1886_v36, %v4505_v3 }
 0x501   : > { %v3449_v53 = vadd.f32 %v1817_v48, %v4498_v41  ;;  %v3465_v59 = vadd.f32 %v1888_v51, %v4502_v61 }
 0x502   : > { %v2834_v54 = vmul.f32 -1.442695, %v3448_v47 }
 0x503   : > { %v2835_v57 = vmul.f32 -1.442695, %v3449_v53  ;;  %v2836_v63 = vmul.f32 -1.442695, %v3465_v59 }
 0x504   : > { %3662 = vpow2.f32 %v2834_v54 }
 0x505   : > { %3664 = vpow2.f32 %v2835_v57 }
 0x506   : > { %3666 = vpow2.f32 %v2836_v63 }
 0x507   : > { %3668 = vtanh.f32 %v3464_v2 }
 0x50e   : > { %v3663_v6 = vpop.eup %3662 }
 0x50f   : > { %v3665_v8 = vpop.eup %3664  ;;  %v1898_v10 = vadd.f32 1.0, %v3663_v6 }
 0x510   : > { %v1904_v13 = vadd.f32 1.0, %v3665_v8  ;;  %v3667_v14 = vpop.eup %3666 }
 0x511   : > { %3670 = vrcp.f32 %v1898_v10  ;;  %v3669_v17 = vpop.eup %3668  ;;  %v1911_v26 = vadd.f32 1.0, %v3667_v14 }
 0x512   : > { %3672 = vrcp.f32 %v1904_v13 }
 0x513   : > { %3674 = vrcp.f32 %v1911_v26 }
 0x51b   : > { %v3671_v19 = vpop.eup %3670 }
 0x51c   : > { %v3673_v22 = vpop.eup %3672  ;;  %v1915_v23 = vmul.f32 %v3671_v19, %v3669_v17 }
 0x51d   : > { %v1914_v30 = vmul.f32 %v3673_v22, %v4594_v33  ;;  %v3675_v37 = vpop.eup %3674 }
 0x51f   : > { %v4637_v32 = vadd.f32 %v1915_v23, %v1914_v30 }
 0x521   : > { %3676 = vtanh.f32 %v4637_v32 }
 0x52b   : > { %v3677_v44 = vpop.eup %3676 }
 0x52c   : > { %v1918_v45 = vmul.f32 %v3677_v44, %v3675_v37 }
 0x52e   : > { %2837 = vst [vmem:[%s4320_s17 + $0x18] sm:$0xff] %v1918_v45  ;;  %1991 = vmatmul.mubr.f32.vlgmr.msra.gmra.mrb[8].mxu0 %v1918_v45  ;;  %2062 = vmatmul.mubr.f32.vlgmr.msra.gmra.mrb[8].mxu1 %v1918_v45 }
 0x52f   : > { %3253 = vmatpush1.bf16.msra.mxu0 %v4345_v49  ;;  %3285 = vmatpush1.bf16.msra.mxu1 %v4348_v52 }
 0x530   : > { %3255 = vmatprep.subr.bf16.mxu0 %v4351_v55  ;;  %3287 = vmatprep.subr.bf16.mxu1 %v4353_v58 }
 0x531   : > { %2167 = vmatprep.mubr.f32.mxu0 %v4025_v9  ;;  %2238 = vmatprep.mubr.f32.mxu1 %v4025_v9 }
 0x533   : > { %3257 = vmatpush1.bf16.msra.mxu0 %v4357_v62  ;;  %3289 = vmatpush1.bf16.msra.mxu1 %v4361_v1 }
 0x534   : > { %3259 = vmatprep.subr.bf16.mxu0 %v4365_v4  ;;  %3291 = vmatprep.subr.bf16.mxu1 %v4368_v7 }
 0x537   : > { %3261 = vmatpush1.bf16.msra.mxu0 %v4372_v12  ;;  %3293 = vmatpush1.bf16.msra.mxu1 %v4376_v15 }
 0x538   : > { %3263 = vmatprep.subr.bf16.mxu0 %v4380_v18  ;;  %3295 = vmatprep.subr.bf16.mxu1 %v4383_v21 }
 0x53b   : > { %3265 = vmatpush1.bf16.msra.mxu0 %v4387_v25  ;;  %3297 = vmatpush1.bf16.msra.mxu1 %v4391_v28 }
 0x53c   : > { %3267 = vmatprep.subr.bf16.mxu0 %v4395_v31  ;;  %3299 = vmatprep.subr.bf16.mxu1 %v4398_v34 }
 0x53f   : > { %3269 = vmatpush1.bf16.msra.mxu0 %v4402_v38  ;;  %3301 = vmatpush1.bf16.msra.mxu1 %v4406_v42 }
 0x540   : > { %3271 = vmatprep.subr.bf16.mxu0 %v4410_v46  ;;  %3303 = vmatprep.subr.bf16.mxu1 %v4413_v50 }
 0x543   : > { %3273 = vmatpush1.bf16.msra.mxu0 %v4417_v56  ;;  %3305 = vmatpush1.bf16.msra.mxu1 %v4421_v60 }
 0x544   : > { %3275 = vmatprep.subr.bf16.mxu0 %v4425_v0  ;;  %3307 = vmatprep.subr.bf16.mxu1 %v4428_v5 }
 0x547   : > { %3277 = vmatpush1.bf16.msra.mxu0 %v4432_v11  ;;  %3309 = vmatpush1.bf16.msra.mxu1 %v4436_v16 }
 0x548   : > { %3279 = vmatprep.subr.bf16.mxu0 %v4440_v20  ;;  %3311 = vmatprep.subr.bf16.mxu1 %v4443_v24 }
 0x54b   : > { %3281 = vmatpush1.bf16.msra.mxu0 %v4447_v27  ;;  %3313 = vmatpush1.bf16.msra.mxu1 %v4451_v29 }
 0x54c   : > { %3315 = vmatprep.subr.bf16.mxu0 %v4340_v40  ;;  %3347 = vmatprep.subr.bf16.mxu1 %v4342_v43 }
 0x601   : > { %v1992_v33 = vpop.f32.mrb[8].mxu0  ;;  %v2063_v35 = vpop.f32.mrb[8].mxu1 }
 0x602   : > { %v3450_v36 = vadd.f32 %v1992_v33, %v4496_v39  ;;  %v1994_v47 = vpop.f32.mrb[9].mxu0  ;;  %v2065_v48 = vpop.f32.mrb[9].mxu1  ;;  %v3466_v63 = vadd.f32 %v2063_v35, %v4505_v3 }
 0x603   : > { %v3451_v51 = vadd.f32 %v1994_v47, %v4498_v41  ;;  %v3467_v57 = vadd.f32 %v2065_v48, %v4502_v61 }
 0x604   : > { %v2838_v53 = vmul.f32 -1.442695, %v3450_v36 }
 0x605   : > { %v2839_v54 = vmul.f32 -1.442695, %v3451_v51  ;;  %v2840_v59 = vmul.f32 -1.442695, %v3467_v57 }
 0x606   : > { %3678 = vpow2.f32 %v2838_v53 }
 0x607   : > { %3680 = vpow2.f32 %v2839_v54 }
 0x608   : > { %3682 = vpow2.f32 %v2840_v59 }
 0x609   : > { %3684 = vtanh.f32 %v3466_v63 }
 0x610   : > { %v3679_v2 = vpop.eup %3678 }
 0x611   : > { %v3681_v6 = vpop.eup %3680  ;;  %v2075_v8 = vadd.f32 1.0, %v3679_v2 }
 0x612   : > { %v2081_v10 = vadd.f32 1.0, %v3681_v6  ;;  %v3683_v13 = vpop.eup %3682 }
 0x613   : > { %3686 = vrcp.f32 %v2075_v8  ;;  %v3685_v14 = vpop.eup %3684  ;;  %v2088_v23 = vadd.f32 1.0, %v3683_v13 }
 0x614   : > { %3688 = vrcp.f32 %v2081_v10 }
 0x615   : > { %3690 = vrcp.f32 %v2088_v23 }
 0x61d   : > { %v3687_v17 = vpop.eup %3686 }
 0x61e   : > { %v3689_v19 = vpop.eup %3688  ;;  %v2092_v22 = vmul.f32 %v3687_v17, %v3685_v14 }
 0x61f   : > { %v2091_v26 = vmul.f32 %v3689_v19, %v4637_v32  ;;  %v3691_v37 = vpop.eup %3690 }
 0x621   : > { %v4680_v30 = vadd.f32 %v2092_v22, %v2091_v26 }
 0x623   : > { %3692 = vtanh.f32 %v4680_v30 }
 0x62d   : > { %v3693_v44 = vpop.eup %3692 }
 0x62e   : > { %v2095_v45 = vmul.f32 %v3693_v44, %v3691_v37 }
 0x630   : > { %2841 = vst [vmem:[%s4320_s17 + $0x20] sm:$0xff] %v2095_v45  ;;  %2168 = vmatmul.mubr.f32.vlgmr.msra.gmra.mrb[10].mxu0 %v2095_v45  ;;  %2239 = vmatmul.mubr.f32.vlgmr.msra.gmra.mrb[10].mxu1 %v2095_v45 }
 0x631   : > { %3317 = vmatpush1.bf16.msra.mxu0 %v4345_v49  ;;  %3349 = vmatpush1.bf16.msra.mxu1 %v4348_v52 }
 0x632   : > { %3319 = vmatprep.subr.bf16.mxu0 %v4351_v55  ;;  %3351 = vmatprep.subr.bf16.mxu1 %v4353_v58 }
 0x633   : > { %2344 = vmatprep.mubr.f32.mxu0 %v4025_v9  ;;  %2415 = vmatprep.mubr.f32.mxu1 %v4025_v9 }
 0x635   : > { %3321 = vmatpush1.bf16.msra.mxu0 %v4357_v62  ;;  %3353 = vmatpush1.bf16.msra.mxu1 %v4361_v1 }
 0x636   : > { %3323 = vmatprep.subr.bf16.mxu0 %v4365_v4  ;;  %3355 = vmatprep.subr.bf16.mxu1 %v4368_v7 }
 0x639   : > { %3325 = vmatpush1.bf16.msra.mxu0 %v4372_v12  ;;  %3357 = vmatpush1.bf16.msra.mxu1 %v4376_v15 }
 0x63a   : > { %3327 = vmatprep.subr.bf16.mxu0 %v4380_v18  ;;  %3359 = vmatprep.subr.bf16.mxu1 %v4383_v21 }
 0x63d   : > { %3329 = vmatpush1.bf16.msra.mxu0 %v4387_v25  ;;  %3361 = vmatpush1.bf16.msra.mxu1 %v4391_v28 }
 0x63e   : > { %3331 = vmatprep.subr.bf16.mxu0 %v4395_v31  ;;  %3363 = vmatprep.subr.bf16.mxu1 %v4398_v34 }
 0x641   : > { %3333 = vmatpush1.bf16.msra.mxu0 %v4402_v38  ;;  %3365 = vmatpush1.bf16.msra.mxu1 %v4406_v42 }
 0x642   : > { %3335 = vmatprep.subr.bf16.mxu0 %v4410_v46  ;;  %3367 = vmatprep.subr.bf16.mxu1 %v4413_v50 }
 0x645   : > { %3337 = vmatpush1.bf16.msra.mxu0 %v4417_v56  ;;  %3369 = vmatpush1.bf16.msra.mxu1 %v4421_v60 }
 0x646   : > { %3339 = vmatprep.subr.bf16.mxu0 %v4425_v0  ;;  %3371 = vmatprep.subr.bf16.mxu1 %v4428_v5 }
 0x649   : > { %3341 = vmatpush1.bf16.msra.mxu0 %v4432_v11  ;;  %3373 = vmatpush1.bf16.msra.mxu1 %v4436_v16 }
 0x64a   : > { %3343 = vmatprep.subr.bf16.mxu0 %v4440_v20  ;;  %3375 = vmatprep.subr.bf16.mxu1 %v4443_v24 }
 0x64d   : > { %3345 = vmatpush1.bf16.msra.mxu0 %v4447_v27  ;;  %3377 = vmatpush1.bf16.msra.mxu1 %v4451_v29 }
 0x64e   : > { %3379 = vmatprep.subr.bf16.mxu0 %v4340_v40  ;;  %3411 = vmatprep.subr.bf16.mxu1 %v4342_v43 }
 0x703   : > { %v2169_v32 = vpop.f32.mrb[10].mxu0  ;;  %v2240_v33 = vpop.f32.mrb[10].mxu1 }
 0x704   : > { %v3452_v35 = vadd.f32 %v2169_v32, %v4496_v39  ;;  %v2171_v36 = vpop.f32.mrb[11].mxu0  ;;  %v2242_v47 = vpop.f32.mrb[11].mxu1  ;;  %v3468_v59 = vadd.f32 %v2240_v33, %v4505_v3 }
 0x705   : > { %v3453_v48 = vadd.f32 %v2171_v36, %v4498_v41  ;;  %v3469_v54 = vadd.f32 %v2242_v47, %v4502_v61 }
 0x706   : > { %v2842_v51 = vmul.f32 -1.442695, %v3452_v35 }
 0x707   : > { %v2843_v53 = vmul.f32 -1.442695, %v3453_v48  ;;  %v2844_v57 = vmul.f32 -1.442695, %v3469_v54 }
 0x708   : > { %3694 = vpow2.f32 %v2842_v51 }
 0x709   : > { %3696 = vpow2.f32 %v2843_v53 }
 0x70a   : > { %3698 = vpow2.f32 %v2844_v57 }
 0x70b   : > { %3700 = vtanh.f32 %v3468_v59 }
 0x712   : > { %v3695_v40 = vpop.eup %3694 }
 0x713   : > { %v3697_v63 = vpop.eup %3696  ;;  %v2252_v43 = vadd.f32 1.0, %v3695_v40 }
 0x714   : > { %v2258_v2 = vadd.f32 1.0, %v3697_v63  ;;  %v3699_v6 = vpop.eup %3698 }
 0x715   : > { %3702 = vrcp.f32 %v2252_v43  ;;  %v3701_v8 = vpop.eup %3700  ;;  %v2265_v17 = vadd.f32 1.0, %v3699_v6 }
 0x716   : > { %3704 = vrcp.f32 %v2258_v2 }
 0x717   : > { %3706 = vrcp.f32 %v2265_v17 }
 0x71f   : > { %v3703_v10 = vpop.eup %3702 }
 0x720   : > { %v3705_v13 = vpop.eup %3704  ;;  %v2269_v14 = vmul.f32 %v3703_v10, %v3701_v8 }
 0x721   : > { %v2268_v19 = vmul.f32 %v3705_v13, %v4680_v30  ;;  %v3707_v23 = vpop.eup %3706 }
 0x723   : > { %v4723_v22 = vadd.f32 %v2269_v14, %v2268_v19 }
 0x725   : > { %3708 = vtanh.f32 %v4723_v22 }
 0x72f   : > { %v3709_v26 = vpop.eup %3708 }
 0x730   : > { %v2272_v37 = vmul.f32 %v3709_v26, %v3707_v23 }
 0x732   : > { %2845 = vst [vmem:[%s4320_s17 + $0x28] sm:$0xff] %v2272_v37  ;;  %2345 = vmatmul.mubr.f32.vlgmr.msra.gmra.mrb[12].mxu0 %v2272_v37  ;;  %2416 = vmatmul.mubr.f32.vlgmr.msra.gmra.mrb[12].mxu1 %v2272_v37 }
 0x733   : > { %3381 = vmatpush1.bf16.msra.mxu0 %v4345_v49  ;;  %3413 = vmatpush1.bf16.msra.mxu1 %v4348_v52 }
 0x734   : > { %3383 = vmatprep.subr.bf16.mxu0 %v4351_v55  ;;  %3415 = vmatprep.subr.bf16.mxu1 %v4353_v58 }
 0x735   : > { %2521 = vmatprep.mubr.f32.mxu0 %v4025_v9  ;;  %2592 = vmatprep.mubr.f32.mxu1 %v4025_v9 }
 0x737   : > { %3385 = vmatpush1.bf16.msra.mxu0 %v4357_v62  ;;  %3417 = vmatpush1.bf16.msra.mxu1 %v4361_v1 }
 0x738   : > { %3387 = vmatprep.subr.bf16.mxu0 %v4365_v4  ;;  %3419 = vmatprep.subr.bf16.mxu1 %v4368_v7 }
 0x73b   : > { %3389 = vmatpush1.bf16.msra.mxu0 %v4372_v12  ;;  %3421 = vmatpush1.bf16.msra.mxu1 %v4376_v15 }
 0x73c   : > { %3391 = vmatprep.subr.bf16.mxu0 %v4380_v18  ;;  %3423 = vmatprep.subr.bf16.mxu1 %v4383_v21 }
 0x73f   : > { %3393 = vmatpush1.bf16.msra.mxu0 %v4387_v25  ;;  %3425 = vmatpush1.bf16.msra.mxu1 %v4391_v28 }
 0x740   : > { %3395 = vmatprep.subr.bf16.mxu0 %v4395_v31  ;;  %3427 = vmatprep.subr.bf16.mxu1 %v4398_v34 }
 0x743   : > { %3397 = vmatpush1.bf16.msra.mxu0 %v4402_v38  ;;  %3429 = vmatpush1.bf16.msra.mxu1 %v4406_v42 }
 0x744   : > { %3399 = vmatprep.subr.bf16.mxu0 %v4410_v46  ;;  %3431 = vmatprep.subr.bf16.mxu1 %v4413_v50 }
 0x747   : > { %3401 = vmatpush1.bf16.msra.mxu0 %v4417_v56  ;;  %3433 = vmatpush1.bf16.msra.mxu1 %v4421_v60 }
 0x748   : > { %3403 = vmatprep.subr.bf16.mxu0 %v4425_v0  ;;  %3435 = vmatprep.subr.bf16.mxu1 %v4428_v5 }
 0x74b   : > { %3405 = vmatpush1.bf16.msra.mxu0 %v4432_v11  ;;  %3437 = vmatpush1.bf16.msra.mxu1 %v4436_v16 }
 0x74c   : > { %3407 = vmatprep.subr.bf16.mxu0 %v4440_v20  ;;  %3439 = vmatprep.subr.bf16.mxu1 %v4443_v24 }
 0x74f   : > { %3409 = vmatpush1.bf16.msra.mxu0 %v4447_v27  ;;  %3441 = vmatpush1.bf16.msra.mxu1 %v4451_v29 }
 0x805   : > { %v2346_v9 = vpop.f32.mrb[12].mxu0  ;;  %v2417_v49 = vpop.f32.mrb[12].mxu1 }
 0x806   : > { %v3454_v52 = vadd.f32 %v2346_v9, %v4496_v39  ;;  %v2348_v55 = vpop.f32.mrb[13].mxu0  ;;  %v2419_v58 = vpop.f32.mrb[13].mxu1  ;;  %v3470_v15 = vadd.f32 %v2417_v49, %v4505_v3 }
 0x807   : > { %v3455_v62 = vadd.f32 %v2348_v55, %v4498_v41  ;;  %v3471_v7 = vadd.f32 %v2419_v58, %v4502_v61 }
 0x808   : > { %v2846_v1 = vmul.f32 -1.442695, %v3454_v52 }
 0x809   : > { %v2847_v4 = vmul.f32 -1.442695, %v3455_v62  ;;  %v2848_v12 = vmul.f32 -1.442695, %v3471_v7 }
 0x80a   : > { %3710 = vpow2.f32 %v2846_v1 }
 0x80b   : > { %3712 = vpow2.f32 %v2847_v4 }
 0x80c   : > { %3714 = vpow2.f32 %v2848_v12 }
 0x80d   : > { %3716 = vtanh.f32 %v3470_v15 }
 0x814   : > { %v3711_v18 = vpop.eup %3710 }
 0x815   : > { %v3713_v21 = vpop.eup %3712  ;;  %v2429_v25 = vadd.f32 1.0, %v3711_v18 }
 0x816   : > { %v2435_v28 = vadd.f32 1.0, %v3713_v21  ;;  %v3715_v31 = vpop.eup %3714 }
 0x817   : > { %3718 = vrcp.f32 %v2429_v25  ;;  %v3717_v34 = vpop.eup %3716  ;;  %v2442_v50 = vadd.f32 1.0, %v3715_v31 }
 0x818   : > { %3720 = vrcp.f32 %v2435_v28 }
 0x819   : > { %3722 = vrcp.f32 %v2442_v50 }
 0x821   : > { %v3719_v38 = vpop.eup %3718 }
 0x822   : > { %v3721_v42 = vpop.eup %3720  ;;  %v2446_v46 = vmul.f32 %v3719_v38, %v3717_v34 }
 0x823   : > { %v2445_v56 = vmul.f32 %v3721_v42, %v4723_v22  ;;  %v3723_v0 = vpop.eup %3722 }
 0x825   : > { %v2447_v60 = vadd.f32 %v2446_v46, %v2445_v56 }
 0x827   : > { %3724 = vtanh.f32 %v2447_v60 }
 0x831   : > { %v3725_v5 = vpop.eup %3724 }
 0x832   : > { %v2449_v11 = vmul.f32 %v3725_v5, %v3723_v0 }
 0x834   : > { %2849 = vst [vmem:[%s4320_s17 + $0x30] sm:$0xff] %v2449_v11  ;;  %2522 = vmatmul.mubr.f32.vlgmr.msra.gmra.mrb[14].mxu0 %v2449_v11  ;;  %2593 = vmatmul.mubr.f32.vlgmr.msra.gmra.mrb[14].mxu1 %v2449_v11 }
 0x907   : > { %v2523_v16 = vpop.f32.mrb[14].mxu0  ;;  %v2594_v20 = vpop.f32.mrb[14].mxu1 }
 0x908   : > { %v3456_v24 = vadd.f32 %v2523_v16, %v4496_v39  ;;  %v2525_v27 = vpop.f32.mrb[15].mxu0  ;;  %v2596_v29 = vpop.f32.mrb[15].mxu1  ;;  %v3472_v35 = vadd.f32 %v2594_v20, %v4505_v3 }
 0x909   : > { %v3457_v30 = vadd.f32 %v2525_v27, %v4498_v41  ;;  %v3473_v32 = vadd.f32 %v2596_v29, %v4502_v61 }
 0x90a   : > { %v2850_v44 = vmul.f32 -1.442695, %v3456_v24 }
 0x90b   : > { %v2851_v45 = vmul.f32 -1.442695, %v3457_v30  ;;  %v2852_v33 = vmul.f32 -1.442695, %v3473_v32 }
 0x90c   : > { %3726 = vpow2.f32 %v2850_v44 }
 0x90d   : > { %3728 = vpow2.f32 %v2851_v45 }
 0x90e   : > { %3730 = vpow2.f32 %v2852_v33 }
 0x90f   : > { %3732 = vtanh.f32 %v3472_v35 }
 0x916   : > { %v3727_v36 = vpop.eup %3726 }
 0x917   : > { %v3729_v47 = vpop.eup %3728  ;;  %v2606_v48 = vadd.f32 1.0, %v3727_v36 }
 0x918   : > { %v2612_v51 = vadd.f32 1.0, %v3729_v47  ;;  %v3731_v39 = vpop.eup %3730 }
 0x919   : > { %3734 = vrcp.f32 %v2606_v48  ;;  %v3733_v41 = vpop.eup %3732  ;;  %v2619_v59 = vadd.f32 1.0, %v3731_v39 }
 0x91a   : > { %3736 = vrcp.f32 %v2612_v51 }
 0x91b   : > { %3738 = vrcp.f32 %v2619_v59 }
 0x923   : > { %v3735_v53 = vpop.eup %3734 }
 0x924   : > { %v3737_v54 = vpop.eup %3736  ;;  %v2623_v57 = vmul.f32 %v3735_v53, %v3733_v41 }
 0x925   : > { %v2622_v40 = vmul.f32 %v3737_v54, %v2447_v60  ;;  %v3739_v3 = vpop.eup %3738 }
 0x927   : > { %v2624_v61 = vadd.f32 %v2623_v57, %v2622_v40 }
 0x929   : > { %3740 = vtanh.f32 %v2624_v61  ;;  %2630 = vst [vmem:[#allocation3] sm:$0xff] %v2624_v61  ;;  %2636 = vst [vmem:[#allocation18] sm:$0xff] (!%p2854_p5), %v2624_v61 }
 0x930   : > { %2634 = sbr.rel (%p2854_p5) target bundleno = 2360 (0x938), region = 76 }
 0x933   : > { %v3741_v63 = vpop.eup %3740 }
 0x934   : > { %v2626_v43 = vmul.f32 %v3741_v63, %v3739_v3 }
 0x936   : > { %2853 = vst [vmem:[%s4320_s17 + $0x38] sm:$0xff] %v2626_v43  ;;  %2629 = vst [vmem:[#allocation2] sm:$0xff] %v2626_v43 }
 0x937   : > { %2635 = vst [vmem:[#allocation16] sm:$0xff] %v2626_v43 }
 0x938 PF: > { %s4026_s25 = smov [#allocation16]   ;;  %s2865_s23 = sshll.u32 %s4102_s13, 10 }
 0x939   : > { %s2665_s18 = sshll.u32 %s4026_s25, 4  ;;  %s4775_s20 = scalar_lea.hbm %s4869_s7, %s2865_s23  ;;  %s2666_s18 = int_to_ptr.vmem [resolvable:$true] %s2665_s18 }
 0x93a   : > { %s3884_s16 = scalar_lea.vmem %s2666_s18, 128  ;;  %p4896_p13 = scmp.eq.s32.totalorder %s4102_s13, 1 }
 0x93b   : > { %p3885_p7 = scmp.ne.s32.totalorder %s2666_s18, %s3884_s16  ;;  %p3891_p0 = scmp.lt.s32.totalorder %s2666_s18, %s2666_s18 }
 0x93c   : > { %p3892_p10 = scmp.lt.s32.totalorder %s3884_s16, %s3884_s16 }
 0x93d   : > { %p3886_p1 = pnand %p3885_p7, %p4896_p13 }
 0x93e   : > { %p3893_p3 = por %p3892_p10, %p3891_p0 }
 0x93f   : > { %p3887_p2 = pneg %p3886_p1 }
 0x941   : > { %p3894_p12 = pnand %p3893_p3, %p3887_p2 }
 0x943   : > { %3897 = shalt.err (!%p3894_p12)
}
 0x944   : > { %s3898_s15 = scalar_lea.hbm %s4870_s8, 128  ;;  %p4897_p9 = pmov %p4896_p13 }
 0x945   : > { %p3899_p4 = scmp.ne.s32.totalorder %s4870_s8, %s3898_s15  ;;  %p3904_p5 = scmp.lt.u32.totalorder %s3898_s15, %s4870_s8 }
 0x947   : > { %p3900_p6 = pnand %p3899_p4, %p4897_p9 }
 0x949   : > { %p3901_p11 = pneg %p3900_p6 }
 0x94b   : > { %p3906_p7 = pnand %p3904_p5, %p3901_p11 }
 0x94d   : > { %3909 = shalt.err (!%p3906_p7)
}
 0x94e   : > { %p4898_p13 = pmov %p4897_p9  ;;  %s2651_s26 = sshll.u32 %s4320_s17, 4  ;;  %s4796_s26 = int_to_ptr.vmem [resolvable:$true] %s2651_s26 }
 0x94f   : > { %s2638_s16 = scalar_lea.sflag [#allocation8], %s4302_s28  ;;  %s3910_s29 = scalar_lea.vmem %s4796_s26, 1024 }
 0x950   : > { %3526 = dma.vmem_to_hbm [thread:$0]  (%p4898_p13), %s2666_s18, 128, %s4870_s8, [#allocation17]  }
 0x951   : > { %p3911_p1 = scmp.ne.s32.totalorder %s4796_s26, %s3910_s29  ;;  %s4027_s27 = smov [#allocation15]  }
 0x952   : > { %s3914_s15 = sshll.u32 %s4027_s27, 4  ;;  %s3915_s15 = int_to_ptr.vmem [resolvable:$false] %s3914_s15 }
 0x953   : > { %p3912_p2 = pnand %p3911_p1, %p4250_p8  ;;  %s3916_s21 = scalar_lea.vmem %s3915_s15, 2048 }
 0x954   : > { %p3917_p10 = scmp.lt.s32.totalorder %s4796_s26, %s3915_s15  ;;  %p3918_p3 = scmp.lt.s32.totalorder %s3916_s21, %s3910_s29 }
 0x955   : > { %p3913_p0 = pneg %p3912_p2 }
 0x956   : > { %p3919_p12 = por %p3918_p3, %p3917_p10 }
 0x958   : > { %p3920_p4 = pnand %p3919_p12, %p3913_p0 }
 0x95a   : > { %3923 = shalt.err (!%p3920_p4)
}
 0x95b   : > { %s3924_s17 = scalar_lea.hbm %s4775_s20, 1024  ;;  %s3928_s24 = scalar_lea.hbm %s4869_s7, 2048 }
 0x95c   : > { %p3925_p9 = scmp.ne.s32.totalorder %s4775_s20, %s3924_s17  ;;  %p3929_p5 = scmp.lt.u32.totalorder %s4775_s20, %s4869_s7 }
 0x95d   : > { %p3930_p7 = scmp.lt.u32.totalorder %s3928_s24, %s3924_s17  ;;  %p3932_p1 = scmp.lt.u32.totalorder %s3924_s17, %s4775_s20 }
 0x95e   : > { %p3926_p6 = pnand %p3925_p9, %p4250_p8 }
 0x95f   : > { %p3931_p13 = por %p3930_p7, %p3929_p5 }
 0x960   : > { %p3927_p11 = pneg %p3926_p6 }
 0x961   : > { %p3933_p2 = por %p3932_p1, %p3931_p13 }
 0x963   : > { %p3934_p0 = pnand %p3933_p2, %p3927_p11 }
 0x965   : > { %3937 = shalt.err (!%p3934_p0)
}
 0x966   : > { %s4028_s22 = smov 128   ;;  %s4029_s29 = smov 8  }
 0x967   : > { %3524 = dma.vmem_to_hbm [thread:$0]  (%p4250_p8), %s4796_s26, 1024, %s4775_s20, %s2638_s16, %s4028_s22, %s4028_s22, %s4029_s29  }
 0x968   : > { %s4030_s27 = smov [#allocation18]   ;;  %p4899_p3 = scmp.eq.s32.totalorder %s4102_s13, 1 }
 0x969   : > { %s2676_s15 = sshll.u32 %s4030_s27, 4  ;;  %s2677_s15 = int_to_ptr.vmem [resolvable:$true] %s2676_s15 }
 0x96a   : > { %s3938_s21 = scalar_lea.vmem %s2677_s15, 128  ;;  %p3945_p9 = scmp.lt.s32.totalorder %s2677_s15, %s2677_s15 }
 0x96b   : > { %p3939_p10 = scmp.ne.s32.totalorder %s2677_s15, %s3938_s21  ;;  %p3946_p6 = scmp.lt.s32.totalorder %s3938_s21, %s3938_s21 }
 0x96d   : > { %p3940_p12 = pnand %p3939_p10, %p4899_p3  ;;  %p3947_p11 = por %p3946_p6, %p3945_p9 }
 0x96f   : > { %p3941_p4 = pneg %p3940_p12 }
 0x971   : > { %p3948_p5 = pnand %p3947_p11, %p3941_p4 }
 0x973   : > { %3951 = shalt.err (!%p3948_p5)
}
 0x974   : > { %s4900_s19 = sld [smem:[#allocation26_spill]]  ;;  %p4901_p7 = pmov %p4899_p3 }
 0x97a   : > { %s3952_s9 = scalar_lea.hbm %s4900_s19, 128 }
 0x97b   : > { %p3953_p8 = scmp.ne.s32.totalorder %s4900_s19, %s3952_s9  ;;  %p3958_p2 = scmp.lt.u32.totalorder %s3952_s9, %s4900_s19 }
 0x97d   : > { %p3954_p13 = pnand %p3953_p8, %p4901_p7 }
 0x97f   : > { %p3955_p1 = pneg %p3954_p13 }
 0x981   : > { %p3960_p0 = pnand %p3958_p2, %p3955_p1 }
 0x983   : > { %3963 = shalt.err (!%p3960_p0)
}
 0x984   : > { %p4902_p10 = pmov %p4899_p3 }
 0x986   : > { %3528 = dma.vmem_to_hbm [thread:$0]  (%p4902_p10), %s2677_s15, 128, %s4900_s19, [#allocation17]  }
 0x987   : > { %3993 = dma.done.wait (%p4899_p3), [#allocation17], 256   ;;  %p4903_p12 = pmov %p4899_p3 }
 0x989   : > { %3995 = vsyncadd (%p4903_p12), [#allocation17], 4294967040 }
 0x98a PF: > { %s4904_s23 = sld [smem:[#allocation24_spill]]  ;;  %s4905_s22 = sld [smem:[#allocation25_spill]] }
 0x98b   : > { %p4907_p9 = scmp.ge.s32.totalorder %s4014_s12, 2 }
 0x990   : > { %s2696_s29 = sand.u32 1, %s4904_s23   ;;  %p4906_p4 = scmp.ne.s32.totalorder %s4905_s22, 0 }
 0x991   : > { %s2697_s27 = scalar_lea.sflag [#allocation8], %s2696_s29 }
 0x992   : > { %p3552_p6 = pnand %p4907_p9, %p4906_p4 }
 0x994   : > { %3997 = dma.done.wait (!%p3552_p6), %s2697_s27, 1024  }
 0x995   : > { %3999 = vsyncadd (!%p3552_p6), %s2697_s27, 4294966272  ;;  %s4908_s15 = smov %s4256_s30  ;;  %p26_p11 = scmp.ge.s32.totalorder %s4240_s14, 4  }
 0x996   : > { %s4909_s30 = smov %s4006_s10  ;;  %s4910_s10 = smov %s4010_s11 }
 0x997   : > { %s4911_s11 = smov %s4908_s15  ;;  %s4912_s12 = smov %s4240_s14 }
 0x998   :  { %28 = sbr.rel (!%p26_p11) target bundleno = 10 (0xa), region = 147 }
 0x99f   :  { %2702 = vsyncpa [#allocation7], 1 }
 0x9a0   :  { %2704 = vsyncpa [#allocation7 + $0x1], 1 }
 0x9a1   :  { %2705 = vsyncpa [#allocation10], 1 }
 0x9a2   :  { %2706 = vsyncpa [#allocation13], 1 }
 0x9a3   :  { %2707 = vsyncpa [#allocation8], 1 }
 0x9a4   :  { %2709 = vsyncpa [#allocation8 + $0x1], 1 }
 0x9a5   :  { %2710 = vsyncpa [#allocation17], 1 }

</bundles_post_ra>
